<compile_context>
chip_gen: v7x
topology: tpu7x:2x2x1
jax: 0.10.0
libtpu: 0.0.40
codegen_flags: <defaults>
</compile_context>

<pallas_src>
import math
import jax
import jax.numpy as jnp
from jax.experimental import pallas as pl
from jax.experimental.pallas import tpu as pltpu

# Small shapes consistent with the module (hidden_layer_size & nhead are constructor kwargs;
# dim_feedforward keeps the PyTorch TransformerEncoderLayer default of 2048).
B, S, IN = 2, 8, 1          # batch, sequence length, input_size
D, H = 32, 4                # hidden_layer_size (d_model), nhead
DH = D // H                 # per-head dim
DFF = 2048                  # PyTorch default dim_feedforward
OUT = 1                     # output_size
LAYERS = 2                  # num_layers
EPS = 1e-5                  # LayerNorm eps (PyTorch default)
BS = B * S


# ---------------------------------------------------------------------------
# Fused kernel, one grid step per encoder layer:
#   step 0: embed -> +PE -> layer 0
#   step 1: layer 1 -> last token -> decode
# ---------------------------------------------------------------------------
def fused_transformer_kernel(
        x_ref,                 # (B*S, IN)           input, already flattened in wrapper
        we_ref, be_ref,        # (IN, D), (1, D)     embedding Linear
        pe_ref,                # (B*S, D)            positional-encoding table (pre-tiled over batch)
        wqkv_ref, bqkv_ref,    # (1, D, 3D), (1, 1, 3D)   fused in-projection (this layer's slice)
        wo_ref, bo_ref,        # (1, D, D),  (1, 1, D)    attention output projection
        g1_ref, be1_ref,       # (1, 1, D) x2             LayerNorm 1
        w1_ref, b1_ref,        # (1, D, DFF) bf16, (1, 1, DFF) f32
        w2_ref, b2_ref,        # (1, DFF, D) bf16, (1, 1, D)   f32
        g2_ref, be2_ref,       # (1, 1, D) x2             LayerNorm 2
        wd_ref, bd_ref,        # (1, D), (1, OUT)         decoder Linear
        o_ref,                 # (B, OUT)
        h_scr):                # VMEM scratch (B*S, D)    running activation across grid steps
    l = pl.program_id(0)

    # --- step 0 only: embedding Linear(1 -> D), scale by sqrt(D), add positional encoding ----
    @pl.when(l == 0)
    def _():
        # input_size == 1 so the Linear is exactly a broadcast multiply.
        emb = x_ref[...] * we_ref[...] + be_ref[...]                 # (BS, D)
        h_scr[...] = emb * jnp.float32(math.sqrt(D)) + pe_ref[...]   # + pe[:, :S, :]
    # TODO(synk): dropout in PositionalEncoding / encoder layers is identity in eval mode.

    def ln(t, g, b):
        # one-pass LayerNorm stats (biased variance, matches PyTorch up to rounding)
        mu = jnp.mean(t, axis=-1, keepdims=True)
        msq = jnp.mean(t * t, axis=-1, keepdims=True)
        var = msq - mu * mu
        return (t - mu) * jax.lax.rsqrt(var + EPS) * g + b

    inv_sqrt_dh = jnp.float32(1.0 / math.sqrt(DH))

    # --- one encoder layer (post-LN, PyTorch default): x = LN1(x + MHA(x)); x = LN2(x + FFN(x)) ---
    h = h_scr[...]                                                   # (BS, D) f32

    # fused QKV projection: one (BS, D) @ (D, 3D) matmul
    qkv = jnp.dot(h, wqkv_ref[0],
                  preferred_element_type=jnp.float32) + bqkv_ref[0]  # (BS, 3D)
    qkv3 = qkv.reshape(B, S, 3 * D)

    # head split done ONCE per tensor: (B, S, DH) lane slices stacked to a (H*B, S, DH) batch
    def split_heads(base):
        return jnp.stack(
            [qkv3[:, :, base + hh * DH: base + (hh + 1) * DH] for hh in range(H)],
            axis=0).reshape(H * B, S, DH)

    qh = split_heads(0)
    kh = split_heads(D)
    vh = split_heads(2 * D)

    # head-batched attention: 2 einsums + 1 softmax per layer (was 8 einsums + 4 softmaxes)
    s = jnp.einsum('nqd,nkd->nqk', qh, kh,
                   preferred_element_type=jnp.float32) * inv_sqrt_dh     # (H*B, S, S)
    s = s - jnp.max(s, axis=-1, keepdims=True)
    p = jnp.exp(s)
    p = p * pl.reciprocal(jnp.sum(p, axis=-1, keepdims=True), approx=True)
    ctx = jnp.einsum('nqk,nkd->nqd', p, vh,
                     preferred_element_type=jnp.float32)                 # (H*B, S, DH)

    # merge heads back to lane-dense (BS, D): one lane-axis concat
    ctx4 = ctx.reshape(H, B, S, DH)
    ctx2 = jnp.concatenate([ctx4[hh] for hh in range(H)], axis=-1).reshape(BS, D)

    # single K=32 output projection
    attn = jnp.dot(ctx2, wo_ref[0],
                   preferred_element_type=jnp.float32) + bo_ref[0]       # (BS, D)
    h = ln(h + attn, g1_ref[0], be1_ref[0])                              # residual + LN1

    # feed-forward (Linear -> ReLU -> Linear) with bf16 weights, f32 accumulation
    h1 = jnp.dot(h.astype(jnp.bfloat16), w1_ref[0],
                 preferred_element_type=jnp.float32) + b1_ref[0]         # (BS, DFF) f32
    h1 = jnp.maximum(h1, 0.0)                                            # ReLU (PyTorch default)
    ff = jnp.dot(h1.astype(jnp.bfloat16), w2_ref[0],
                 preferred_element_type=jnp.float32) + b2_ref[0]         # (BS, D) f32
    h = ln(h + ff, g2_ref[0], be2_ref[0])                                # residual + LN2

    h_scr[...] = h                                                       # carry to next grid step

    # --- last step only: last token + decoder Linear(D -> 1) as VPU multiply + lane reduce ---
    @pl.when(l == LAYERS - 1)
    def _():
        h3 = h.reshape(B, S, D)
        x_last = h3[:, S - 1, :]                                         # (B, D)
        o_ref[...] = (jnp.sum(x_last * wd_ref[...], axis=-1, keepdims=True)
                      + bd_ref[...])


def fused_transformer(src2d, params):
    args = (src2d, params['we'], params['be'], params['pe_bs'],
            params['wqkv'], params['bqkv'], params['wo'], params['bo'],
            params['g1'], params['be1'], params['w1'], params['b1'],
            params['w2'], params['b2'], params['g2'], params['be2'],
            params['wd'], params['bd'])

    def full(shape):                       # layer-invariant arrays: DMA'd once (index unchanged)
        return pl.BlockSpec(shape, lambda l, _s=shape: tuple(0 for _ in _s))

    def per_layer(shape):                  # per-layer slice of a (LAYERS, ...) stacked array
        return pl.BlockSpec((1,) + shape, lambda l, _s=shape: (l,) + tuple(0 for _ in _s))

    in_specs = [
        full((BS, IN)),                                  # x
        full((IN, D)), full((1, D)), full((BS, D)),      # we, be, pe
        per_layer((D, 3 * D)), per_layer((1, 3 * D)),    # wqkv, bqkv
        per_layer((D, D)), per_layer((1, D)),            # wo, bo
        per_layer((1, D)), per_layer((1, D)),            # g1, be1
        per_layer((D, DFF)), per_layer((1, DFF)),        # w1, b1
        per_layer((DFF, D)), per_layer((1, D)),          # w2, b2
        per_layer((1, D)), per_layer((1, D)),            # g2, be2
        full((1, D)), full((1, OUT)),                    # wd, bd
    ]

    return pl.pallas_call(
        fused_transformer_kernel,
        out_shape=jax.ShapeDtypeStruct((B, OUT), jnp.float32),
        grid=(LAYERS,),
        in_specs=in_specs,
        out_specs=pl.BlockSpec((B, OUT), lambda l: (0, 0)),
        scratch_shapes=[pltpu.VMEM((BS, D), jnp.float32)],
        compiler_params=pltpu.CompilerParams(
            dimension_semantics=("arbitrary",)),
    )(*args)


# ---------------------------------------------------------------------------
# Parameter init (deterministic, synthetic) + positional-encoding table
# ---------------------------------------------------------------------------
def make_positional_encoding(seq_len, d_model):
    position = jnp.arange(seq_len, dtype=jnp.float32)[:, None]
    div_term = jnp.exp(jnp.arange(0, d_model, 2, dtype=jnp.float32)
                       * (-math.log(10000.0) / d_model))
    pe = jnp.zeros((seq_len, d_model), jnp.float32)
    pe = pe.at[:, 0::2].set(jnp.sin(position * div_term))
    pe = pe.at[:, 1::2].set(jnp.cos(position * div_term))
    return pe                                     # (S, D)


def init_params(key):
    keys = iter(jax.random.split(key, 32))

    def w(fan_in, shape, dtype=jnp.float32):
        v = jax.random.normal(next(keys), shape, jnp.float32) * (1.0 / math.sqrt(fan_in))
        return v.astype(dtype)

    zeros = lambda shape: jnp.zeros(shape, jnp.float32)
    ones = lambda shape: jnp.ones(shape, jnp.float32)

    pe = make_positional_encoding(S, D)           # (S, D)
    return {
        # embedding Linear(1, D)
        'we': w(IN, (IN, D)), 'be': zeros((1, D)),
        # positional encoding pre-tiled to the flattened, batch-first (B*S, D) layout
        'pe_bs': jnp.tile(pe, (B, 1)),
        # per-layer params stacked along a leading LAYERS axis (sliced per grid step by BlockSpec)
        'wqkv': w(D, (LAYERS, D, 3 * D)), 'bqkv': zeros((LAYERS, 1, 3 * D)),
        'wo': w(D, (LAYERS, D, D)), 'bo': zeros((LAYERS, 1, D)),
        'g1': ones((LAYERS, 1, D)), 'be1': zeros((LAYERS, 1, D)),
        'w1': w(D, (LAYERS, D, DFF), jnp.bfloat16), 'b1': zeros((LAYERS, 1, DFF)),
        'w2': w(DFF, (LAYERS, DFF, D), jnp.bfloat16), 'b2': zeros((LAYERS, 1, D)),
        'g2': ones((LAYERS, 1, D)), 'be2': zeros((LAYERS, 1, D)),
        # decoder Linear(D, 1) — weight kept in (OUT, D) row form for the VPU reduce
        'wd': w(D, (1, D)), 'bd': zeros((1, OUT)),
    }


@jax.jit
def transformer_forward(src, params):
    src2d = src.reshape(BS, IN)                   # flatten (B, S, IN) -> (B*S, IN) outside kernel
    return fused_transformer(src2d, params)       # (B, OUT)


if __name__ == "__main__":
    key = jax.random.PRNGKey(0)
    k_x, k_p = jax.random.split(key)
    src = jax.random.normal(k_x, (B, S, IN), jnp.float32)      # (batch, seq, input_size)
    params = init_params(k_p)

    out = transformer_forward(src, params)
    out = jax.block_until_ready(out)
    assert out.shape == (B, OUT) and out.dtype == jnp.float32
    assert bool(jnp.all(jnp.isfinite(out)))
    print("KERNEL_OK")
</pallas_src>

<mosaic_0001>
module attributes {stable_mosaic.version = 11 : i64} {
  func.func @fused_transformer_kernel(%arg0: i32, %arg1: memref<16x1xf32, #tpu.memory_space<vmem>>, %arg2: memref<1x32xf32, #tpu.memory_space<vmem>>, %arg3: memref<1x32xf32, #tpu.memory_space<vmem>>, %arg4: memref<16x32xf32, #tpu.memory_space<vmem>>, %arg5: memref<1x32x96xf32, #tpu.memory_space<vmem>>, %arg6: memref<1x1x96xf32, #tpu.memory_space<vmem>>, %arg7: memref<1x32x32xf32, #tpu.memory_space<vmem>>, %arg8: memref<1x1x32xf32, #tpu.memory_space<vmem>>, %arg9: memref<1x1x32xf32, #tpu.memory_space<vmem>>, %arg10: memref<1x1x32xf32, #tpu.memory_space<vmem>>, %arg11: memref<1x32x2048xbf16, #tpu.memory_space<vmem>>, %arg12: memref<1x1x2048xf32, #tpu.memory_space<vmem>>, %arg13: memref<1x2048x32xbf16, #tpu.memory_space<vmem>>, %arg14: memref<1x1x32xf32, #tpu.memory_space<vmem>>, %arg15: memref<1x1x32xf32, #tpu.memory_space<vmem>>, %arg16: memref<1x1x32xf32, #tpu.memory_space<vmem>>, %arg17: memref<1x32xf32, #tpu.memory_space<vmem>>, %arg18: memref<1x1xf32, #tpu.memory_space<vmem>>, %arg19: memref<2x1xf32, #tpu.memory_space<vmem>>, %arg20: memref<16x32xf32, #tpu.memory_space<vmem>>) attributes {dimension_semantics = [#tpu.dimension_semantics<arbitrary>], iteration_bounds = array<i64: 2>, scalar_prefetch = 0 : i64, scratch_operands = 1 : i64, tpu.core_type = #tpu.core_type<tc>, window_params = [{pipeline_mode = #tpu.pipeline_mode<synchronous>, transform_indices = @transform_0, window_bounds = array<i64: 16, 1>}, {pipeline_mode = #tpu.pipeline_mode<synchronous>, transform_indices = @transform_1, window_bounds = array<i64: 1, 32>}, {pipeline_mode = #tpu.pipeline_mode<synchronous>, transform_indices = @transform_2, window_bounds = array<i64: 1, 32>}, {pipeline_mode = #tpu.pipeline_mode<synchronous>, transform_indices = @transform_3, window_bounds = array<i64: 16, 32>}, {transform_indices = @transform_4, window_bounds = array<i64: 1, 32, 96>}, {transform_indices = @transform_5, window_bounds = array<i64: 1, 1, 96>}, {transform_indices = @transform_6, window_bounds = array<i64: 1, 32, 32>}, {transform_indices = @transform_7, window_bounds = array<i64: 1, 1, 32>}, {transform_indices = @transform_8, window_bounds = array<i64: 1, 1, 32>}, {transform_indices = @transform_9, window_bounds = array<i64: 1, 1, 32>}, {transform_indices = @transform_10, window_bounds = array<i64: 1, 32, 2048>}, {transform_indices = @transform_11, window_bounds = array<i64: 1, 1, 2048>}, {transform_indices = @transform_12, window_bounds = array<i64: 1, 2048, 32>}, {transform_indices = @transform_13, window_bounds = array<i64: 1, 1, 32>}, {transform_indices = @transform_14, window_bounds = array<i64: 1, 1, 32>}, {transform_indices = @transform_15, window_bounds = array<i64: 1, 1, 32>}, {pipeline_mode = #tpu.pipeline_mode<synchronous>, transform_indices = @transform_16, window_bounds = array<i64: 1, 32>}, {pipeline_mode = #tpu.pipeline_mode<synchronous>, transform_indices = @transform_17, window_bounds = array<i64: 1, 1>}, {pipeline_mode = #tpu.pipeline_mode<synchronous>, transform_indices = @transform_18, window_bounds = array<i64: 2, 1>}]} {
    %c0_i32 = arith.constant 0 : i32
    %0 = arith.cmpi eq, %arg0, %c0_i32 : i32
    %1 = arith.extui %0 : i1 to i32
    %c0_i32_0 = arith.constant 0 : i32
    %2 = arith.cmpi ne, %1, %c0_i32_0 : i32
    scf.if %2 {
      %c0_60 = arith.constant 0 : index
      %c0_61 = arith.constant 0 : index
      %150 = vector.load %arg1[%c0_60, %c0_61] : memref<16x1xf32, #tpu.memory_space<vmem>>, vector<16x1xf32>
      %c0_62 = arith.constant 0 : index
      %c0_63 = arith.constant 0 : index
      %151 = vector.load %arg2[%c0_62, %c0_63] : memref<1x32xf32, #tpu.memory_space<vmem>>, vector<1x32xf32>
      %152 = vector.broadcast %150 : vector<16x1xf32> to vector<16x32xf32>
      %153 = vector.broadcast %151 : vector<1x32xf32> to vector<16x32xf32>
      %154 = arith.mulf %152, %153 : vector<16x32xf32>
      %c0_64 = arith.constant 0 : index
      %c0_65 = arith.constant 0 : index
      %155 = vector.load %arg3[%c0_64, %c0_65] : memref<1x32xf32, #tpu.memory_space<vmem>>, vector<1x32xf32>
      %156 = vector.broadcast %155 : vector<1x32xf32> to vector<16x32xf32>
      %157 = arith.addf %154, %156 : vector<16x32xf32>
      %cst_66 = arith.constant 5.65685415 : f32
      %158 = vector.broadcast %cst_66 : f32 to vector<16x32xf32>
      %159 = arith.mulf %157, %158 : vector<16x32xf32>
      %c0_67 = arith.constant 0 : index
      %c0_68 = arith.constant 0 : index
      %160 = vector.load %arg4[%c0_67, %c0_68] : memref<16x32xf32, #tpu.memory_space<vmem>>, vector<16x32xf32>
      %161 = arith.addf %159, %160 : vector<16x32xf32>
      %c0_69 = arith.constant 0 : index
      %c0_70 = arith.constant 0 : index
      %162 = vector.load %arg20[%c0_69, %c0_70] : memref<16x32xf32, #tpu.memory_space<vmem>>, vector<16x32xf32>
      tpu.vector_store %arg20[%c0_69, %c0_70], %161 {strides = array<i32>} : memref<16x32xf32, #tpu.memory_space<vmem>>, vector<16x32xf32>,
    } else {
    }
    %c0 = arith.constant 0 : index
    %c0_1 = arith.constant 0 : index
    %3 = vector.load %arg20[%c0, %c0_1] : memref<16x32xf32, #tpu.memory_space<vmem>>, vector<16x32xf32>
    %c0_2 = arith.constant 0 : index
    %c0_3 = arith.constant 0 : index
    %c0_4 = arith.constant 0 : index
    %4 = vector.load %arg5[%c0_2, %c0_3, %c0_4] : memref<1x32x96xf32, #tpu.memory_space<vmem>>, vector<1x32x96xf32>
    %5 = vector.shape_cast %4 : vector<1x32x96xf32> to vector<32x96xf32>
    %cst = arith.constant dense<0.000000e+00> : vector<16x96xf32>
    %6 = tpu.matmul %3, %5, %cst {dimension_numbers = #tpu.dot_dimension_numbers<[1], [0], [0], [1], [0, 0, 1, 1], [], []>} : vector<16x32xf32>, vector<32x96xf32>, vector<16x96xf32> -> vector<16x96xf32>
    %c0_5 = arith.constant 0 : index
    %c0_6 = arith.constant 0 : index
    %c0_7 = arith.constant 0 : index
    %7 = vector.load %arg6[%c0_5, %c0_6, %c0_7] : memref<1x1x96xf32, #tpu.memory_space<vmem>>, vector<1x1x96xf32>
    %8 = vector.shape_cast %7 : vector<1x1x96xf32> to vector<1x96xf32>
    %9 = vector.broadcast %8 : vector<1x96xf32> to vector<16x96xf32>
    %10 = arith.addf %6, %9 : vector<16x96xf32>
    %11 = vector.shape_cast %10 : vector<16x96xf32> to vector<2x8x96xf32>
    %12 = vector.extract_strided_slice %11 {offsets = [0, 0, 0], sizes = [2, 8, 8], strides = [1, 1, 1]} : vector<2x8x96xf32> to vector<2x8x8xf32>
    %13 = vector.extract_strided_slice %11 {offsets = [0, 0, 8], sizes = [2, 8, 8], strides = [1, 1, 1]} : vector<2x8x96xf32> to vector<2x8x8xf32>
    %14 = vector.extract_strided_slice %11 {offsets = [0, 0, 16], sizes = [2, 8, 8], strides = [1, 1, 1]} : vector<2x8x96xf32> to vector<2x8x8xf32>
    %15 = vector.extract_strided_slice %11 {offsets = [0, 0, 24], sizes = [2, 8, 8], strides = [1, 1, 1]} : vector<2x8x96xf32> to vector<2x8x8xf32>
    %16 = vector.shape_cast %12 : vector<2x8x8xf32> to vector<1x2x8x8xf32>
    %17 = vector.shape_cast %13 : vector<2x8x8xf32> to vector<1x2x8x8xf32>
    %18 = vector.shape_cast %14 : vector<2x8x8xf32> to vector<1x2x8x8xf32>
    %19 = vector.shape_cast %15 : vector<2x8x8xf32> to vector<1x2x8x8xf32>
    %20 = tpu.concatenate %16, %17, %18, %19 in 0 : vector<1x2x8x8xf32>, vector<1x2x8x8xf32>, vector<1x2x8x8xf32>, vector<1x2x8x8xf32> -> vector<4x2x8x8xf32>
    %21 = vector.shape_cast %20 : vector<4x2x8x8xf32> to vector<8x8x8xf32>
    %22 = vector.extract_strided_slice %11 {offsets = [0, 0, 32], sizes = [2, 8, 8], strides = [1, 1, 1]} : vector<2x8x96xf32> to vector<2x8x8xf32>
    %23 = vector.extract_strided_slice %11 {offsets = [0, 0, 40], sizes = [2, 8, 8], strides = [1, 1, 1]} : vector<2x8x96xf32> to vector<2x8x8xf32>
    %24 = vector.extract_strided_slice %11 {offsets = [0, 0, 48], sizes = [2, 8, 8], strides = [1, 1, 1]} : vector<2x8x96xf32> to vector<2x8x8xf32>
    %25 = vector.extract_strided_slice %11 {offsets = [0, 0, 56], sizes = [2, 8, 8], strides = [1, 1, 1]} : vector<2x8x96xf32> to vector<2x8x8xf32>
    %26 = vector.shape_cast %22 : vector<2x8x8xf32> to vector<1x2x8x8xf32>
    %27 = vector.shape_cast %23 : vector<2x8x8xf32> to vector<1x2x8x8xf32>
    %28 = vector.shape_cast %24 : vector<2x8x8xf32> to vector<1x2x8x8xf32>
    %29 = vector.shape_cast %25 : vector<2x8x8xf32> to vector<1x2x8x8xf32>
    %30 = tpu.concatenate %26, %27, %28, %29 in 0 : vector<1x2x8x8xf32>, vector<1x2x8x8xf32>, vector<1x2x8x8xf32>, vector<1x2x8x8xf32> -> vector<4x2x8x8xf32>
    %31 = vector.shape_cast %30 : vector<4x2x8x8xf32> to vector<8x8x8xf32>
    %32 = vector.extract_strided_slice %11 {offsets = [0, 0, 64], sizes = [2, 8, 8], strides = [1, 1, 1]} : vector<2x8x96xf32> to vector<2x8x8xf32>
    %33 = vector.extract_strided_slice %11 {offsets = [0, 0, 72], sizes = [2, 8, 8], strides = [1, 1, 1]} : vector<2x8x96xf32> to vector<2x8x8xf32>
    %34 = vector.extract_strided_slice %11 {offsets = [0, 0, 80], sizes = [2, 8, 8], strides = [1, 1, 1]} : vector<2x8x96xf32> to vector<2x8x8xf32>
    %35 = vector.extract_strided_slice %11 {offsets = [0, 0, 88], sizes = [2, 8, 8], strides = [1, 1, 1]} : vector<2x8x96xf32> to vector<2x8x8xf32>
    %36 = vector.shape_cast %32 : vector<2x8x8xf32> to vector<1x2x8x8xf32>
    %37 = vector.shape_cast %33 : vector<2x8x8xf32> to vector<1x2x8x8xf32>
    %38 = vector.shape_cast %34 : vector<2x8x8xf32> to vector<1x2x8x8xf32>
    %39 = vector.shape_cast %35 : vector<2x8x8xf32> to vector<1x2x8x8xf32>
    %40 = tpu.concatenate %36, %37, %38, %39 in 0 : vector<1x2x8x8xf32>, vector<1x2x8x8xf32>, vector<1x2x8x8xf32>, vector<1x2x8x8xf32> -> vector<4x2x8x8xf32>
    %41 = vector.shape_cast %40 : vector<4x2x8x8xf32> to vector<8x8x8xf32>
    "tpu.trace_start"() <{level = 10 : i32, message = "nqd,nkd->nqk"}> : () -> ()
    %cst_8 = arith.constant dense<0.000000e+00> : vector<8x8x8xf32>
    %42 = tpu.matmul %21, %31, %cst_8 {dimension_numbers = #tpu.dot_dimension_numbers<[2], [2], [1], [1], [0, 0, 0, 1, 1, 1], [0], [0]>} : vector<8x8x8xf32>, vector<8x8x8xf32>, vector<8x8x8xf32> -> vector<8x8x8xf32>
    "tpu.trace_stop"() : () -> ()
    %cst_9 = arith.constant 0.353553385 : f32
    %43 = vector.broadcast %cst_9 : f32 to vector<8x8x8xf32>
    %44 = arith.mulf %42, %43 : vector<8x8x8xf32>
    %cst_10 = arith.constant dense<0xFF800000> : vector<8x8xf32>
    %45 = vector.multi_reduction <maximumf>, %44, %cst_10 [2] : vector<8x8x8xf32> to vector<8x8xf32>
    %46 = vector.shape_cast %45 : vector<8x8xf32> to vector<8x8x1xf32>
    %47 = vector.broadcast %46 : vector<8x8x1xf32> to vector<8x8x8xf32>
    %48 = arith.subf %44, %47 : vector<8x8x8xf32>
    %49 = math.exp %48 : vector<8x8x8xf32>
    %cst_11 = arith.constant dense<0.000000e+00> : vector<8x8xf32>
    %50 = vector.multi_reduction <add>, %49, %cst_11 [2] : vector<8x8x8xf32> to vector<8x8xf32>
    %51 = vector.shape_cast %50 : vector<8x8xf32> to vector<8x8x1xf32>
    %52 = tpu.reciprocal %51 {approx = true} : vector<8x8x1xf32> -> vector<8x8x1xf32>
    %53 = vector.broadcast %52 : vector<8x8x1xf32> to vector<8x8x8xf32>
    %54 = arith.mulf %49, %53 : vector<8x8x8xf32>
    "tpu.trace_start"() <{level = 10 : i32, message = "nqk,nkd->nqd"}> : () -> ()
    %cst_12 = arith.constant dense<0.000000e+00> : vector<8x8x8xf32>
    %55 = tpu.matmul %54, %41, %cst_12 {dimension_numbers = #tpu.dot_dimension_numbers<[2], [1], [1], [2], [0, 0, 0, 1, 1, 2], [0], [0]>} : vector<8x8x8xf32>, vector<8x8x8xf32>, vector<8x8x8xf32> -> vector<8x8x8xf32>
    "tpu.trace_stop"() : () -> ()
    %56 = vector.shape_cast %55 : vector<8x8x8xf32> to vector<4x2x8x8xf32>
    %57 = vector.extract_strided_slice %56 {offsets = [0, 0, 0, 0], sizes = [1, 2, 8, 8], strides = [1, 1, 1, 1]} : vector<4x2x8x8xf32> to vector<1x2x8x8xf32>
    %58 = vector.shape_cast %57 : vector<1x2x8x8xf32> to vector<2x8x8xf32>
    %59 = vector.extract_strided_slice %56 {offsets = [1, 0, 0, 0], sizes = [1, 2, 8, 8], strides = [1, 1, 1, 1]} : vector<4x2x8x8xf32> to vector<1x2x8x8xf32>
    %60 = vector.shape_cast %59 : vector<1x2x8x8xf32> to vector<2x8x8xf32>
    %61 = vector.extract_strided_slice %56 {offsets = [2, 0, 0, 0], sizes = [1, 2, 8, 8], strides = [1, 1, 1, 1]} : vector<4x2x8x8xf32> to vector<1x2x8x8xf32>
    %62 = vector.shape_cast %61 : vector<1x2x8x8xf32> to vector<2x8x8xf32>
    %63 = vector.extract_strided_slice %56 {offsets = [3, 0, 0, 0], sizes = [1, 2, 8, 8], strides = [1, 1, 1, 1]} : vector<4x2x8x8xf32> to vector<1x2x8x8xf32>
    %64 = vector.shape_cast %63 : vector<1x2x8x8xf32> to vector<2x8x8xf32>
    %65 = tpu.concatenate %58, %60, %62, %64 in 2 : vector<2x8x8xf32>, vector<2x8x8xf32>, vector<2x8x8xf32>, vector<2x8x8xf32> -> vector<2x8x32xf32>
    %66 = vector.shape_cast %65 : vector<2x8x32xf32> to vector<16x32xf32>
    %c0_13 = arith.constant 0 : index
    %c0_14 = arith.constant 0 : index
    %c0_15 = arith.constant 0 : index
    %67 = vector.load %arg7[%c0_13, %c0_14, %c0_15] : memref<1x32x32xf32, #tpu.memory_space<vmem>>, vector<1x32x32xf32>
    %68 = vector.shape_cast %67 : vector<1x32x32xf32> to vector<32x32xf32>
    %cst_16 = arith.constant dense<0.000000e+00> : vector<16x32xf32>
    %69 = tpu.matmul %66, %68, %cst_16 {dimension_numbers = #tpu.dot_dimension_numbers<[1], [0], [0], [1], [0, 0, 1, 1], [], []>} : vector<16x32xf32>, vector<32x32xf32>, vector<16x32xf32> -> vector<16x32xf32>
    %c0_17 = arith.constant 0 : index
    %c0_18 = arith.constant 0 : index
    %c0_19 = arith.constant 0 : index
    %70 = vector.load %arg8[%c0_17, %c0_18, %c0_19] : memref<1x1x32xf32, #tpu.memory_space<vmem>>, vector<1x1x32xf32>
    %71 = vector.shape_cast %70 : vector<1x1x32xf32> to vector<1x32xf32>
    %72 = vector.broadcast %71 : vector<1x32xf32> to vector<16x32xf32>
    %73 = arith.addf %69, %72 : vector<16x32xf32>
    %74 = arith.addf %3, %73 : vector<16x32xf32>
    %c0_20 = arith.constant 0 : index
    %c0_21 = arith.constant 0 : index
    %c0_22 = arith.constant 0 : index
    %75 = vector.load %arg9[%c0_20, %c0_21, %c0_22] : memref<1x1x32xf32, #tpu.memory_space<vmem>>, vector<1x1x32xf32>
    %76 = vector.shape_cast %75 : vector<1x1x32xf32> to vector<1x32xf32>
    %c0_23 = arith.constant 0 : index
    %c0_24 = arith.constant 0 : index
    %c0_25 = arith.constant 0 : index
    %77 = vector.load %arg10[%c0_23, %c0_24, %c0_25] : memref<1x1x32xf32, #tpu.memory_space<vmem>>, vector<1x1x32xf32>
    %78 = vector.shape_cast %77 : vector<1x1x32xf32> to vector<1x32xf32>
    %cst_26 = arith.constant dense<0.000000e+00> : vector<16xf32>
    %79 = vector.multi_reduction <add>, %74, %cst_26 [1] : vector<16x32xf32> to vector<16xf32>
    %80 = vector.shape_cast %79 : vector<16xf32> to vector<16x1xf32>
    %cst_27 = arith.constant 3.200000e+01 : f32
    %81 = vector.broadcast %cst_27 : f32 to vector<16x1xf32>
    %82 = arith.divf %80, %81 : vector<16x1xf32>
    %83 = arith.mulf %74, %74 : vector<16x32xf32>
    %cst_28 = arith.constant dense<0.000000e+00> : vector<16xf32>
    %84 = vector.multi_reduction <add>, %83, %cst_28 [1] : vector<16x32xf32> to vector<16xf32>
    %85 = vector.shape_cast %84 : vector<16xf32> to vector<16x1xf32>
    %cst_29 = arith.constant 3.200000e+01 : f32
    %86 = vector.broadcast %cst_29 : f32 to vector<16x1xf32>
    %87 = arith.divf %85, %86 : vector<16x1xf32>
    %88 = arith.mulf %82, %82 : vector<16x1xf32>
    %89 = arith.subf %87, %88 : vector<16x1xf32>
    %90 = vector.broadcast %82 : vector<16x1xf32> to vector<16x32xf32>
    %91 = arith.subf %74, %90 : vector<16x32xf32>
    %cst_30 = arith.constant 9.99999974E-6 : f32
    %92 = vector.broadcast %cst_30 : f32 to vector<16x1xf32>
    %93 = arith.addf %89, %92 : vector<16x1xf32>
    %94 = math.rsqrt %93 : vector<16x1xf32>
    %95 = vector.broadcast %94 : vector<16x1xf32> to vector<16x32xf32>
    %96 = arith.mulf %91, %95 : vector<16x32xf32>
    %97 = vector.broadcast %76 : vector<1x32xf32> to vector<16x32xf32>
    %98 = arith.mulf %96, %97 : vector<16x32xf32>
    %99 = vector.broadcast %78 : vector<1x32xf32> to vector<16x32xf32>
    %100 = arith.addf %98, %99 : vector<16x32xf32>
    %101 = arith.truncf %100 : vector<16x32xf32> to vector<16x32xbf16>
    %c0_31 = arith.constant 0 : index
    %c0_32 = arith.constant 0 : index
    %c0_33 = arith.constant 0 : index
    %102 = vector.load %arg11[%c0_31, %c0_32, %c0_33] : memref<1x32x2048xbf16, #tpu.memory_space<vmem>>, vector<1x32x2048xbf16>
    %103 = vector.shape_cast %102 : vector<1x32x2048xbf16> to vector<32x2048xbf16>
    %cst_34 = arith.constant dense<0.000000e+00> : vector<16x2048xf32>
    %104 = tpu.matmul %101, %103, %cst_34 {dimension_numbers = #tpu.dot_dimension_numbers<[1], [0], [0], [1], [0, 0, 1, 1], [], []>} : vector<16x32xbf16>, vector<32x2048xbf16>, vector<16x2048xf32> -> vector<16x2048xf32>
    %c0_35 = arith.constant 0 : index
    %c0_36 = arith.constant 0 : index
    %c0_37 = arith.constant 0 : index
    %105 = vector.load %arg12[%c0_35, %c0_36, %c0_37] : memref<1x1x2048xf32, #tpu.memory_space<vmem>>, vector<1x1x2048xf32>
    %106 = vector.shape_cast %105 : vector<1x1x2048xf32> to vector<1x2048xf32>
    %107 = vector.broadcast %106 : vector<1x2048xf32> to vector<16x2048xf32>
    %108 = arith.addf %104, %107 : vector<16x2048xf32>
    %cst_38 = arith.constant 0.000000e+00 : f32
    %109 = vector.broadcast %cst_38 : f32 to vector<16x2048xf32>
    %110 = arith.maximumf %108, %109 : vector<16x2048xf32>
    %111 = arith.truncf %110 : vector<16x2048xf32> to vector<16x2048xbf16>
    %c0_39 = arith.constant 0 : index
    %c0_40 = arith.constant 0 : index
    %c0_41 = arith.constant 0 : index
    %112 = vector.load %arg13[%c0_39, %c0_40, %c0_41] : memref<1x2048x32xbf16, #tpu.memory_space<vmem>>, vector<1x2048x32xbf16>
    %113 = vector.shape_cast %112 : vector<1x2048x32xbf16> to vector<2048x32xbf16>
    %cst_42 = arith.constant dense<0.000000e+00> : vector<16x32xf32>
    %114 = tpu.matmul %111, %113, %cst_42 {dimension_numbers = #tpu.dot_dimension_numbers<[1], [0], [0], [1], [0, 0, 1, 1], [], []>} : vector<16x2048xbf16>, vector<2048x32xbf16>, vector<16x32xf32> -> vector<16x32xf32>
    %c0_43 = arith.constant 0 : index
    %c0_44 = arith.constant 0 : index
    %c0_45 = arith.constant 0 : index
    %115 = vector.load %arg14[%c0_43, %c0_44, %c0_45] : memref<1x1x32xf32, #tpu.memory_space<vmem>>, vector<1x1x32xf32>
    %116 = vector.shape_cast %115 : vector<1x1x32xf32> to vector<1x32xf32>
    %117 = vector.broadcast %116 : vector<1x32xf32> to vector<16x32xf32>
    %118 = arith.addf %114, %117 : vector<16x32xf32>
    %119 = arith.addf %100, %118 : vector<16x32xf32>
    %c0_46 = arith.constant 0 : index
    %c0_47 = arith.constant 0 : index
    %c0_48 = arith.constant 0 : index
    %120 = vector.load %arg15[%c0_46, %c0_47, %c0_48] : memref<1x1x32xf32, #tpu.memory_space<vmem>>, vector<1x1x32xf32>
    %121 = vector.shape_cast %120 : vector<1x1x32xf32> to vector<1x32xf32>
    %c0_49 = arith.constant 0 : index
    %c0_50 = arith.constant 0 : index
    %c0_51 = arith.constant 0 : index
    %122 = vector.load %arg16[%c0_49, %c0_50, %c0_51] : memref<1x1x32xf32, #tpu.memory_space<vmem>>, vector<1x1x32xf32>
    %123 = vector.shape_cast %122 : vector<1x1x32xf32> to vector<1x32xf32>
    %cst_52 = arith.constant dense<0.000000e+00> : vector<16xf32>
    %124 = vector.multi_reduction <add>, %119, %cst_52 [1] : vector<16x32xf32> to vector<16xf32>
    %125 = vector.shape_cast %124 : vector<16xf32> to vector<16x1xf32>
    %cst_53 = arith.constant 3.200000e+01 : f32
    %126 = vector.broadcast %cst_53 : f32 to vector<16x1xf32>
    %127 = arith.divf %125, %126 : vector<16x1xf32>
    %128 = arith.mulf %119, %119 : vector<16x32xf32>
    %cst_54 = arith.constant dense<0.000000e+00> : vector<16xf32>
    %129 = vector.multi_reduction <add>, %128, %cst_54 [1] : vector<16x32xf32> to vector<16xf32>
    %130 = vector.shape_cast %129 : vector<16xf32> to vector<16x1xf32>
    %cst_55 = arith.constant 3.200000e+01 : f32
    %131 = vector.broadcast %cst_55 : f32 to vector<16x1xf32>
    %132 = arith.divf %130, %131 : vector<16x1xf32>
    %133 = arith.mulf %127, %127 : vector<16x1xf32>
    %134 = arith.subf %132, %133 : vector<16x1xf32>
    %135 = vector.broadcast %127 : vector<16x1xf32> to vector<16x32xf32>
    %136 = arith.subf %119, %135 : vector<16x32xf32>
    %cst_56 = arith.constant 9.99999974E-6 : f32
    %137 = vector.broadcast %cst_56 : f32 to vector<16x1xf32>
    %138 = arith.addf %134, %137 : vector<16x1xf32>
    %139 = math.rsqrt %138 : vector<16x1xf32>
    %140 = vector.broadcast %139 : vector<16x1xf32> to vector<16x32xf32>
    %141 = arith.mulf %136, %140 : vector<16x32xf32>
    %142 = vector.broadcast %121 : vector<1x32xf32> to vector<16x32xf32>
    %143 = arith.mulf %141, %142 : vector<16x32xf32>
    %144 = vector.broadcast %123 : vector<1x32xf32> to vector<16x32xf32>
    %145 = arith.addf %143, %144 : vector<16x32xf32>
    %c0_57 = arith.constant 0 : index
    %c0_58 = arith.constant 0 : index
    %146 = vector.load %arg20[%c0_57, %c0_58] : memref<16x32xf32, #tpu.memory_space<vmem>>, vector<16x32xf32>
    tpu.vector_store %arg20[%c0_57, %c0_58], %145 {strides = array<i32>} : memref<16x32xf32, #tpu.memory_space<vmem>>, vector<16x32xf32>,
    %c1_i32 = arith.constant 1 : i32
    %147 = arith.cmpi eq, %arg0, %c1_i32 : i32
    %148 = arith.extui %147 : i1 to i32
    %c0_i32_59 = arith.constant 0 : i32
    %149 = arith.cmpi ne, %148, %c0_i32_59 : i32
    scf.if %149 {
      %150 = vector.shape_cast %145 : vector<16x32xf32> to vector<2x8x32xf32>
      %151 = vector.extract_strided_slice %150 {offsets = [0, 7, 0], sizes = [2, 1, 32], strides = [1, 1, 1]} : vector<2x8x32xf32> to vector<2x1x32xf32>
      %152 = vector.shape_cast %151 : vector<2x1x32xf32> to vector<2x32xf32>
      %c0_60 = arith.constant 0 : index
      %c0_61 = arith.constant 0 : index
      %153 = vector.load %arg17[%c0_60, %c0_61] : memref<1x32xf32, #tpu.memory_space<vmem>>, vector<1x32xf32>
      %154 = vector.broadcast %153 : vector<1x32xf32> to vector<2x32xf32>
      %155 = arith.mulf %152, %154 : vector<2x32xf32>
      %cst_62 = arith.constant dense<0.000000e+00> : vector<2xf32>
      %156 = vector.multi_reduction <add>, %155, %cst_62 [1] : vector<2x32xf32> to vector<2xf32>
      %157 = vector.shape_cast %156 : vector<2xf32> to vector<2x1xf32>
      %c0_63 = arith.constant 0 : index
      %c0_64 = arith.constant 0 : index
      %158 = vector.load %arg18[%c0_63, %c0_64] : memref<1x1xf32, #tpu.memory_space<vmem>>, vector<1x1xf32>
      %159 = vector.broadcast %158 : vector<1x1xf32> to vector<2x1xf32>
      %160 = arith.addf %157, %159 : vector<2x1xf32>
      %c0_65 = arith.constant 0 : index
      %c0_66 = arith.constant 0 : index
      %161 = vector.load %arg19[%c0_65, %c0_66] : memref<2x1xf32, #tpu.memory_space<vmem>>, vector<2x1xf32>
      tpu.vector_store %arg19[%c0_65, %c0_66], %160 {strides = array<i32>} : memref<2x1xf32, #tpu.memory_space<vmem>>, vector<2x1xf32>,
    } else {
    }
    return
  }
  func.func @transform_0(%arg0: i32) -> (i32, i32) {
    %c0_i32 = arith.constant 0 : i32
    %c0_i32_0 = arith.constant 0 : i32
    %c0_i32_1 = arith.constant 0 : i32
    return %c0_i32, %c0_i32_0 : i32, i32
  }
  func.func @transform_1(%arg0: i32) -> (i32, i32) {
    %c0_i32 = arith.constant 0 : i32
    %c0_i32_0 = arith.constant 0 : i32
    %c0_i32_1 = arith.constant 0 : i32
    return %c0_i32, %c0_i32_0 : i32, i32
  }
  func.func @transform_2(%arg0: i32) -> (i32, i32) {
    %c0_i32 = arith.constant 0 : i32
    %c0_i32_0 = arith.constant 0 : i32
    %c0_i32_1 = arith.constant 0 : i32
    return %c0_i32, %c0_i32_0 : i32, i32
  }
  func.func @transform_3(%arg0: i32) -> (i32, i32) {
    %c0_i32 = arith.constant 0 : i32
    %c0_i32_0 = arith.constant 0 : i32
    %c0_i32_1 = arith.constant 0 : i32
    return %c0_i32, %c0_i32_0 : i32, i32
  }
  func.func @transform_4(%arg0: i32) -> (i32, i32, i32) {
    %c0_i32 = arith.constant 0 : i32
    %c0_i32_0 = arith.constant 0 : i32
    %c0_i32_1 = arith.constant 0 : i32
    return %arg0, %c0_i32, %c0_i32_0 : i32, i32, i32
  }
  func.func @transform_5(%arg0: i32) -> (i32, i32, i32) {
    %c0_i32 = arith.constant 0 : i32
    %c0_i32_0 = arith.constant 0 : i32
    %c0_i32_1 = arith.constant 0 : i32
    return %arg0, %c0_i32, %c0_i32_0 : i32, i32, i32
  }
  func.func @transform_6(%arg0: i32) -> (i32, i32, i32) {
    %c0_i32 = arith.constant 0 : i32
    %c0_i32_0 = arith.constant 0 : i32
    %c0_i32_1 = arith.constant 0 : i32
    return %arg0, %c0_i32, %c0_i32_0 : i32, i32, i32
  }
  func.func @transform_7(%arg0: i32) -> (i32, i32, i32) {
    %c0_i32 = arith.constant 0 : i32
    %c0_i32_0 = arith.constant 0 : i32
    %c0_i32_1 = arith.constant 0 : i32
    return %arg0, %c0_i32, %c0_i32_0 : i32, i32, i32
  }
  func.func @transform_8(%arg0: i32) -> (i32, i32, i32) {
    %c0_i32 = arith.constant 0 : i32
    %c0_i32_0 = arith.constant 0 : i32
    %c0_i32_1 = arith.constant 0 : i32
    return %arg0, %c0_i32, %c0_i32_0 : i32, i32, i32
  }
  func.func @transform_9(%arg0: i32) -> (i32, i32, i32) {
    %c0_i32 = arith.constant 0 : i32
    %c0_i32_0 = arith.constant 0 : i32
    %c0_i32_1 = arith.constant 0 : i32
    return %arg0, %c0_i32, %c0_i32_0 : i32, i32, i32
  }
  func.func @transform_10(%arg0: i32) -> (i32, i32, i32) {
    %c0_i32 = arith.constant 0 : i32
    %c0_i32_0 = arith.constant 0 : i32
    %c0_i32_1 = arith.constant 0 : i32
    return %arg0, %c0_i32, %c0_i32_0 : i32, i32, i32
  }
  func.func @transform_11(%arg0: i32) -> (i32, i32, i32) {
    %c0_i32 = arith.constant 0 : i32
    %c0_i32_0 = arith.constant 0 : i32
    %c0_i32_1 = arith.constant 0 : i32
    return %arg0, %c0_i32, %c0_i32_0 : i32, i32, i32
  }
  func.func @transform_12(%arg0: i32) -> (i32, i32, i32) {
    %c0_i32 = arith.constant 0 : i32
    %c0_i32_0 = arith.constant 0 : i32
    %c0_i32_1 = arith.constant 0 : i32
    return %arg0, %c0_i32, %c0_i32_0 : i32, i32, i32
  }
  func.func @transform_13(%arg0: i32) -> (i32, i32, i32) {
    %c0_i32 = arith.constant 0 : i32
    %c0_i32_0 = arith.constant 0 : i32
    %c0_i32_1 = arith.constant 0 : i32
    return %arg0, %c0_i32, %c0_i32_0 : i32, i32, i32
  }
  func.func @transform_14(%arg0: i32) -> (i32, i32, i32) {
    %c0_i32 = arith.constant 0 : i32
    %c0_i32_0 = arith.constant 0 : i32
    %c0_i32_1 = arith.constant 0 : i32
    return %arg0, %c0_i32, %c0_i32_0 : i32, i32, i32
  }
  func.func @transform_15(%arg0: i32) -> (i32, i32, i32) {
    %c0_i32 = arith.constant 0 : i32
    %c0_i32_0 = arith.constant 0 : i32
    %c0_i32_1 = arith.constant 0 : i32
    return %arg0, %c0_i32, %c0_i32_0 : i32, i32, i32
  }
  func.func @transform_16(%arg0: i32) -> (i32, i32) {
    %c0_i32 = arith.constant 0 : i32
    %c0_i32_0 = arith.constant 0 : i32
    %c0_i32_1 = arith.constant 0 : i32
    return %c0_i32, %c0_i32_0 : i32, i32
  }
  func.func @transform_17(%arg0: i32) -> (i32, i32) {
    %c0_i32 = arith.constant 0 : i32
    %c0_i32_0 = arith.constant 0 : i32
    %c0_i32_1 = arith.constant 0 : i32
    return %c0_i32, %c0_i32_0 : i32, i32
  }
  func.func @transform_18(%arg0: i32) -> (i32, i32) {
    %c0_i32 = arith.constant 0 : i32
    %c0_i32_0 = arith.constant 0 : i32
    %c0_i32_1 = arith.constant 0 : i32
    return %c0_i32, %c0_i32_0 : i32, i32
  }
}

</mosaic_0001>

<bundles_post_ra>
// kernel: transformer_forward.1
= control target key start
LH: loop header
LB: loop body
LE: loop exit
PB: predicated region body
PF: predicated region fallthrough
CT: control target
= control target key end

     0   :  { %s5515_s29 = smov 0   ;;  %s6113_s0 = inlined_call_operand.vmem [shape: f32[16,1], index: 0, kind: input, shape index: {}]   ;;  %s6114_s1 = inlined_call_operand.vmem [shape: f32[1,32], index: 1, kind: input, shape index: {}]   ;;  %s6115_s2 = inlined_call_operand.vmem [shape: f32[1,32], index: 2, kind: input, shape index: {}]   ;;  %s6116_s3 = inlined_call_operand.vmem [shape: f32[16,32], index: 3, kind: input, shape index: {}]   ;;  %s6117_s4 = inlined_call_operand.vmem [shape: f32[2,32,96], index: 4, kind: input, shape index: {}]   ;;  %s6118_s5 = inlined_call_operand.vmem [shape: f32[2,1,96], index: 5, kind: input, shape index: {}]   ;;  %s6119_s6 = inlined_call_operand.vmem [shape: f32[2,32,32], index: 6, kind: input, shape index: {}]   ;;  %s6120_s7 = inlined_call_operand.vmem [shape: f32[2,1,32], index: 7, kind: input, shape index: {}]   ;;  %s6121_s8 = inlined_call_operand.vmem [shape: f32[2,1,32], index: 8, kind: input, shape index: {}]   ;;  %s6122_s9 = inlined_call_operand.vmem [shape: f32[2,1,32], index: 9, kind: input, shape index: {}]   ;;  %s6123_s10 = inlined_call_operand.vmem [shape: bf16[2,32,2048], index: 10, kind: input, shape index: {}]   ;;  %s6124_s11 = inlined_call_operand.vmem [shape: f32[2,1,2048], index: 11, kind: input, shape index: {}]   ;;  %s6125_s12 = inlined_call_operand.vmem [shape: bf16[2,2048,32], index: 12, kind: input, shape index: {}]   ;;  %s6126_s13 = inlined_call_operand.vmem [shape: f32[2,1,32], index: 13, kind: input, shape index: {}]   ;;  %s6127_s14 = inlined_call_operand.vmem [shape: f32[2,1,32], index: 14, kind: input, shape index: {}]   ;;  %s6128_s15 = inlined_call_operand.vmem [shape: f32[2,1,32], index: 15, kind: input, shape index: {}]   ;;  %s6129_s16 = inlined_call_operand.vmem [shape: f32[1,32], index: 16, kind: input, shape index: {}]   ;;  %s6130_s17 = inlined_call_operand.<no memory space> [shape: f32[1,1], index: 17, kind: input, shape index: {}]   ;;  %s6131_s18 = inlined_call_operand.vmem [shape: f32[2,1], index: 18, kind: output, shape index: {}]  }
   0x1   :  { %6135 = sst [smem:[#allocation5_spill]] %s6113_s0  ;;  %v23_v0 = vstv %s6130_s17 }
   0x2   :  { %6136 = sst [smem:[#allocation6_spill]] %s6114_s1  ;;  %24 = vst [vmem:[#allocation3] sm:$0x1] %v23_v0 }
   0x3   :  { %6137 = sst [smem:[#allocation7_spill]] %s6115_s2 }
   0x4   :  { %6138 = sst [smem:[#allocation8_spill]] %s6117_s4 }
   0x5   :  { %6139 = sst [smem:[#allocation9_spill]] %s6118_s5 }
   0x6   :  { %6140 = sst [smem:[#allocation10_spill]] %s6119_s6 }
   0x7   :  { %6141 = sst [smem:[#allocation11_spill]] %s6129_s16 }
   0x8   :  { %6142 = sst [smem:[#allocation12_spill]] %s6131_s18 }
   0x9 LB: > { %6143 = sst [smem:[#allocation4_spill]] %s5403_s29  ;;  %s5521_s30 = sadd.s32 4294967295, %s5403_s29   ;;  %s5403_s29 = sphi %s5515_s29, %s30_s29  }
   0xa   : > { %p4643_p0 = scmp.ge.s32.totalorder %s5403_s29, 1  ;;  %p604_p1 = scmp.lt.s32.totalorder %s5403_s29, 3 }
   0xc   : > { %p605_p2 = pnand %p4643_p0, %p604_p1 }
   0xd   : > { %p693_p3 = scmp.lt.s32.totalorder (!%p605_p2), %s5521_s30, 1  ;;  %s6145_s4 = sld [smem:[#allocation8_spill]] (!%p605_p2) }
   0xe   : > { %608 = sbr.rel (%p605_p2) target bundleno = 2752 (0xac0), region = 92  ;;  %s6146_s6 = sld [smem:[#allocation10_spill]] (!%p605_p2) }
   0xf   : > { %p4653_p4 = scmp.ne.s32.totalorder (!%p605_p2), %s5521_s30, 0 }
  0x15   : > { %s5527_s17 = scalar_select %p693_p3, %s5521_s30, 1 }
  0x16   : > { %742 = sbr.rel (%p4653_p4) target bundleno = 170 (0xaa), region = 96  ;;  %s6147_s28 = sld [smem:[#allocation5_spill]] (!%p4653_p4)  ;;  %v5405_v2 = vmov (!%p4653_p4), 0   ;;  %v775_v9 = vld [vmem:[%s6116_s3] sm:$0xff] (!%p4653_p4)  ;;  %vm779_vm0 = vcmask (!%p4653_p4), 261120   ;;  %v776_v15 = vld [vmem:[%s6116_s3 + $0x8] sm:$0xff] (!%p4653_p4) }
  0x17   : > { %s4864_s0 = sshll.u32 %s5527_s17, 5  ;;  %s4866_s21 = sshll.u32 %s5527_s17, 8  ;;  %5226 = vset.pattern.permute.xlu0 (!%p4653_p4), %v5405_v2 }
  0x18   : > { %s5537_s2 = scalar_lea.vmem %s6145_s4, %s4864_s0  ;;  %s5542_s25 = scalar_lea.vmem %s6146_s6, %s4864_s0 }
  0x19   : > { %s5560_s5 = scalar_lea.vmem %s6123_s10, %s4866_s21  ;;  %s4650_s0 = sshll.u32 %s5527_s17, 4 }
  0x1a   : > { %s5566_s26 = scalar_lea.vmem %s6124_s11, %s4650_s0  ;;  %s4867_s27 = sshll.u32 %s5527_s17, 10 }
  0x1b   : > { %s5572_s29 = scalar_lea.vmem %s6125_s12, %s4867_s27  ;;  %s731_s20 = scalar_lea.vmem %s6126_s13, %s5527_s17 }
  0x1c   : > { %s734_s21 = scalar_lea.vmem %s6127_s14, %s5527_s17  ;;  %s737_s23 = scalar_lea.vmem %s6128_s15, %s5527_s17  ;;  %v743_v1 = vld [vmem:[%s6147_s28] sm:$0xff] (!%p4653_p4)  ;;  %v744_v3 = vld [vmem:[%s6147_s28 + $0x8] sm:$0xff] (!%p4653_p4) }
  0x1d   : > { %748 = vperm.xlu0 %5226, %v743_v1   ;;  %s6148_s1 = sld [smem:[#allocation6_spill]]  ;;  %s6149_s22 = sld [smem:[#allocation7_spill]] }
  0x21   : > { %753 = vperm.xlu0 %5226, %v744_v3  }
  0x23   : > { %v4654_v4 = vld [vmem:[%s6148_s1] ss:$0 sm:$0xff] }
  0x24   : > { %v4655_v5 = vld [vmem:[%s6149_s22] ss:$0 sm:$0xff] }
  0x9c   : > { %v749_v6 = vpop.permute.xlu0 %748 }
  0x9d   : > { %v762_v7 = vmul.f32 %v4654_v4, %v749_v6 }
  0x9f   : > { %v771_v8 = vadd.f32 %v4655_v5, %v762_v7 }
  0xa0   : > { %v754_v10 = vpop.permute.xlu0 %753 }
  0xa1   : > { %v773_v11 = vmul.f32 5.656854, %v771_v8  ;;  %v763_v12 = vmul.f32 %v4654_v4, %v754_v10 }
  0xa3   : > { %v777_v13 = vadd.f32 %v775_v9, %v773_v11  ;;  %v772_v14 = vadd.f32 %v4655_v5, %v763_v12 }
  0xa5   : > { %780 = vst.msk [vmem:[#allocation2] sm:$0xff] %vm779_vm0, %v777_v13  ;;  %v774_v16 = vmul.f32 5.656854, %v772_v14 }
  0xa7   : > { %v778_v17 = vadd.f32 %v776_v15, %v774_v16 }
  0xa9   : > { %781 = vst.msk [vmem:[#allocation2 + $0x8] sm:$0xff] %vm779_vm0, %v778_v17 }
  0xaa PF: > { %v784_v18 = vld [vmem:[%s5537_s2] sm:$0xff]  ;;  %v785_v19 = vld [vmem:[%s5537_s2 + $0x8] sm:$0xff]  ;;  %v786_v20 = vld [vmem:[%s5537_s2 + $0x10] sm:$0xff]  ;;  %vm795_vm1 = vcmask 261120   ;;  %s6150_s1 = sld [smem:[#allocation9_spill]]  ;;  %v5406_v28 = vmov 0.0  }
  0xab   : > { %v5190_v21 = vpack.c.bf16 %v785_v19, %v784_v18  ;;  %v787_v22 = vld [vmem:[%s5537_s2 + $0x18] sm:$0xff]  ;;  %5099 = vmatprep.subr.mxu1 %v5406_v28  ;;  %s5407_s2 = smov 112   ;;  %s5408_s4 = smov 120   ;;  %vm5409_vm2 = vmmov 0   ;;  %vm893_vm3 = vcmask 64512   ;;  %vm2230_vm4 = vcmask 130048  }
  0xac   : > { %v782_v23 = vld [vmem:[#allocation2] sm:$0xff]  ;;  %v5194_v24 = vpack.c.bf16 %v787_v22, %v786_v20  ;;  %5101 = vmatprep.mubr.msk.f32.mxu1 %vm5409_vm2, %v5406_v28  ;;  %s5410_s22 = smov 104   ;;  %s5411_s0 = smov 96   ;;  %vm2233_vm5 = vcmask 195584  }
  0xad   : > { %5096 = vmatprep.mubr.msk.f32.mxu0 %vm795_vm1, %v782_v23  ;;  %5191 = vmatprep.subr.bf16.mxu0 %v5190_v21  ;;  %s5412_s24 = smov 64   ;;  %s5413_s27 = smov 8  }
  0xae   : > { %5193 = vmatpush3.bf16.msra.mxu0 %v5190_v21  ;;  %s5414_s18 = smov 16   ;;  %s5415_s16 = smov 24  }
  0xaf   : > { %5195 = vmatprep.subr.bf16.mxu0 %v5194_v24  ;;  %p4859_p5 = scmp.ne.s32.totalorder %s5521_s30, 1 }
  0xb0   : > { %v783_v25 = vld [vmem:[#allocation2 + $0x8] sm:$0xff]  ;;  %s6151_s6 = scalar_lea.vmem %s6150_s1, %s5527_s17  ;;  %s6152_s1 = scalar_lea.vmem %s6120_s7, %s5527_s17  ;;  %vm4480_vm6 = vcmask (!%p4859_p5), 261127   ;;  %vm4484_vm7 = vcmask (!%p4859_p5), 253952   ;;  %vm4497_vm8 = vcmask (!%p4859_p5), 7175   ;;  %vm4499_vm9 = vcmask (!%p4859_p5), 0  }
  0xb1   : > { %v4656_v26 = vld [vmem:[%s6151_s6] ss:$0 sm:$0xff] }
  0xb2   : > { %5197 = vmatpush3.bf16.msra.mxu0 %v5194_v24 }
  0xb3   : > { %5119 = vmatprep.subr.mxu0 %v5406_v28 }
  0xb5   : > { %5097 = vmatmul.mubr.msk.f32.vlgmr.msra.gmra.mrb[0].mxu0 %vm795_vm1, %v783_v25 }
  0xb6   : > { %5121 = vmatprep.mubr.msk.f32.mxu0 %vm5409_vm2, %v5406_v28 }
 0x188   : > { %v5098_v27 = vpop.f32.mrb[0].mxu0 }
 0x189   : > { %v868_v29 = vpop.f32.mrb[1].mxu0  ;;  %v5626_v31 = vadd.f32 %v5098_v27, %v4656_v26 }
 0x18a   : > { %v5618_v30 = vadd.f32 %v4656_v26, %v868_v29 }
 0x18c   : > { %883 = vrot.lane.b32.xlu1 %v5618_v30, %s5407_s2  ;;  %879 = vrot.lane.b32.xlu0 %v5618_v30, %s5408_s4 }
 0x190   : > { %885 = vrot.lane.b32.xlu1 %v5626_v31, %s5407_s2  ;;  %881 = vrot.lane.b32.xlu0 %v5626_v31, %s5408_s4  ;;  %s6153_s4 = scalar_lea.vmem %s6121_s8, %s5527_s17 }
 0x194   : > { %889 = vrot.lane.b32.xlu1 %v5626_v31, %s5410_s22  ;;  %887 = vrot.lane.b32.xlu0 %v5618_v30, %s5410_s22 }
 0x198   : > { %968 = vrot.lane.b32.xlu1 %v5626_v31, %s5411_s0  ;;  %891 = vrot.lane.b32.xlu0 %v5618_v30, %s5411_s0 }
 0x1fe   : > { %v5634_v32 = vpop.permute.xlu1 %883  ;;  %v5636_v33 = vpop.permute.xlu0 %879 }
 0x1ff   : > { %1044 = vrot.lane.b32.xlu0 %v5636_v33, %s5411_s0 }
 0x202   : > { %v5639_v34 = vpop.permute.xlu1 %885  ;;  %v5641_v35 = vpop.permute.xlu0 %881 }
 0x203   : > { %1196 = vrot.lane.b32.xlu0 %v5634_v32, %s5411_s0  ;;  %1120 = vrot.lane.b32.xlu1 %v5641_v35, %s5411_s0 }
 0x206   : > { %v5645_v36 = vpop.permute.xlu0 %887  ;;  %v5649_v37 = vpop.permute.xlu1 %889 }
 0x207   : > { %1272 = vrot.lane.b32.xlu1 %v5639_v34, %s5411_s0  ;;  %1348 = vrot.lane.b32.xlu0 %v5645_v36, %s5411_s0 }
 0x20a   : > { %v892_v38 = vpop.permute.xlu0 %891  ;;  %v969_v39 = vpop.permute.xlu1 %968 }
 0x20b   : > { %1424 = vrot.lane.b32.xlu1 %v5649_v37, %s5411_s0  ;;  %5100 = vmatpush3.xpose.msk.msra.mxu1 %vm893_vm3, %v892_v38 }
 0x20c   : > { %5104 = vmatprep.subr.mxu1 %v5406_v28 }
 0x20e   : > { %5102 = vmatmul.mubr.msk.f32.vlgmr.msra.gmra.mrb[0].mxu1 %vm893_vm3, %v5618_v30 }
 0x20f   : > { %5105 = vmatpush3.xpose.msk.msra.mxu1 %vm893_vm3, %v969_v39  ;;  %5106 = vmatprep.mubr.msk.f32.mxu1 %vm5409_vm2, %v5406_v28 }
 0x210   : > { %5109 = vmatprep.subr.mxu1 %v5406_v28 }
 0x212   : > { %5107 = vmatmul.mubr.msk.f32.vlgmr.msra.gmra.mrb[2].mxu1 %vm893_vm3, %v5626_v31 }
 0x213   : > { %5111 = vmatprep.mubr.msk.f32.mxu1 %vm5409_vm2, %v5406_v28 }
 0x271   : > { %v1045_v40 = vpop.permute.xlu0 %1044 }
 0x272   : > { %5110 = vmatpush3.xpose.msk.msra.mxu1 %vm893_vm3, %v1045_v40 }
 0x273   : > { %5114 = vmatprep.subr.mxu1 %v5406_v28 }
 0x275   : > { %v1121_v41 = vpop.permute.xlu1 %1120  ;;  %5112 = vmatmul.mubr.msk.f32.vlgmr.msra.gmra.mrb[4].mxu1 %vm893_vm3, %v5636_v33  ;;  %v1197_v42 = vpop.permute.xlu0 %1196 }
 0x276   : > { %5115 = vmatpush3.xpose.msk.msra.mxu1 %vm893_vm3, %v1121_v41  ;;  %5120 = vmatpush3.xpose.msk.msra.mxu0 %vm893_vm3, %v1197_v42 }
 0x277   : > { %5116 = vmatprep.mubr.msk.f32.mxu1 %vm5409_vm2, %v5406_v28  ;;  %5124 = vmatprep.subr.mxu1 %v5406_v28 }
 0x278   : > { %5129 = vmatprep.subr.mxu0 %v5406_v28 }
 0x279   : > { %v1273_v43 = vpop.permute.xlu1 %1272  ;;  %5117 = vmatmul.mubr.msk.f32.vlgmr.msra.gmra.mrb[6].mxu1 %vm893_vm3, %v5641_v35  ;;  %5122 = vmatmul.mubr.msk.f32.vlgmr.msra.gmra.mrb[2].mxu0 %vm893_vm3, %v5634_v32  ;;  %v1349_v44 = vpop.permute.xlu0 %1348 }
 0x27a   : > { %5125 = vmatpush3.xpose.msk.msra.mxu1 %vm893_vm3, %v1273_v43  ;;  %5130 = vmatpush3.xpose.msk.msra.mxu0 %vm893_vm3, %v1349_v44 }
 0x27b   : > { %5126 = vmatprep.mubr.msk.f32.mxu1 %vm5409_vm2, %v5406_v28  ;;  %5131 = vmatprep.mubr.msk.f32.mxu0 %vm5409_vm2, %v5406_v28 }
 0x27c   : > { %5134 = vmatprep.subr.mxu1 %v5406_v28  ;;  %5139 = vmatprep.subr.mxu0 %v5406_v28 }
 0x27d   : > { %v1425_v45 = vpop.permute.xlu1 %1424  ;;  %5127 = vmatmul.mubr.msk.f32.vlgmr.msra.gmra.mrb[8].mxu1 %vm893_vm3, %v5639_v34  ;;  %5132 = vmatmul.mubr.msk.f32.vlgmr.msra.gmra.mrb[4].mxu0 %vm893_vm3, %v5645_v36 }
 0x27e   : > { %5135 = vmatpush3.xpose.msk.msra.mxu1 %vm893_vm3, %v1425_v45  ;;  %5136 = vmatprep.mubr.msk.f32.mxu1 %vm5409_vm2, %v5406_v28 }
 0x27f   : > { %5144 = vmatprep.subr.mxu1 %v5406_v28  ;;  %5141 = vmatprep.mubr.msk.f32.mxu0 %vm5409_vm2, %v5406_v28 }
 0x281   : > { %5137 = vmatmul.mubr.msk.f32.vlgmr.msra.gmra.mrb[10].mxu1 %vm893_vm3, %v5649_v37 }
 0x282   : > { %5146 = vmatprep.mubr.msk.f32.mxu1 %vm5409_vm2, %v5406_v28 }
 0x2e1   : > { %v964_v46 = vpop.f32.mrb[0].mxu1 }
 0x2e2   : > { %v1500_v47 = vmul.f32 0.35355338, %v964_v46  ;;  %v5103_v48 = vpop.f32.mrb[1].mxu1 }
 0x2e4   : > { %v1508_v49 = vsel %vm893_vm3, %v1500_v47, -inf }
 0x2e5   : > { %1509 = vmax.xlane.f32.xlu0 %v1508_v49  ;;  %v1040_v50 = vpop.f32.mrb[2].mxu1 }
 0x2e6   : > { %v1501_v51 = vmul.f32 0.35355338, %v1040_v50  ;;  %v5108_v52 = vpop.f32.mrb[3].mxu1 }
 0x2e8   : > { %v1511_v53 = vsel %vm893_vm3, %v1501_v51, -inf }
 0x2e9   : > { %1512 = vmax.xlane.f32.xlu1 %v1511_v53 }
 0x348   : > { %v1116_v54 = vpop.f32.mrb[4].mxu1 }
 0x349   : > { %v1502_v55 = vmul.f32 0.35355338, %v1116_v54  ;;  %v5113_v56 = vpop.f32.mrb[5].mxu1 }
 0x34b   : > { %v1514_v57 = vsel %vm893_vm3, %v1502_v55, -inf }
 0x34c   : > { %1515 = vmax.xlane.f32.xlu0 %v1514_v57  ;;  %v1192_v58 = vpop.f32.mrb[6].mxu1  ;;  %v1268_v59 = vpop.f32.mrb[2].mxu0 }
 0x34d   : > { %v1503_v60 = vmul.f32 0.35355338, %v1192_v58  ;;  %v1504_v61 = vmul.f32 0.35355338, %v1268_v59  ;;  %v5118_v62 = vpop.f32.mrb[7].mxu1  ;;  %v5123_v63 = vpop.f32.mrb[3].mxu0 }
 0x34f   : > { %v1517_v0 = vsel %vm893_vm3, %v1503_v60, -inf  ;;  %v1520_v1 = vsel %vm893_vm3, %v1504_v61, -inf }
 0x350   : > { %1518 = vmax.xlane.f32.xlu0 %v1517_v0  ;;  %v1344_v2 = vpop.f32.mrb[8].mxu1  ;;  %1521 = vmax.xlane.f32.xlu1 %v1520_v1  ;;  %v1420_v3 = vpop.f32.mrb[4].mxu0 }
 0x351   : > { %v1505_v4 = vmul.f32 0.35355338, %v1344_v2  ;;  %v1506_v5 = vmul.f32 0.35355338, %v1420_v3  ;;  %v5128_v6 = vpop.f32.mrb[9].mxu1  ;;  %v5133_v7 = vpop.f32.mrb[5].mxu0 }
 0x353   : > { %v1523_v8 = vsel %vm893_vm3, %v1505_v4, -inf  ;;  %v1526_v9 = vsel %vm893_vm3, %v1506_v5, -inf }
 0x354   : > { %1524 = vmax.xlane.f32.xlu0 %v1523_v8  ;;  %v1496_v10 = vpop.f32.mrb[10].mxu1  ;;  %1527 = vmax.xlane.f32.xlu1 %v1526_v9 }
 0x355   : > { %v1507_v11 = vmul.f32 0.35355338, %v1496_v10  ;;  %v5138_v12 = vpop.f32.mrb[11].mxu1 }
 0x357   : > { %v1529_v13 = vsel %vm893_vm3, %v1507_v11, -inf }
 0x358   : > { %1530 = vmax.xlane.f32.xlu0 %v1529_v13 }
 0x365   : > { %1596 = vrot.lane.b32.xlu1 %v5618_v30, %s5412_s24 }
 0x369   : > { %1748 = vrot.lane.b32.xlu1 %v5636_v33, %s5412_s24 }
 0x36d   : > { %1824 = vrot.lane.b32.xlu1 %v5641_v35, %s5412_s24 }
 0x36e   : > { %1672 = vrot.lane.b32.xlu0 %v5626_v31, %s5412_s24 }
 0x371   : > { %1976 = vrot.lane.b32.xlu1 %v5639_v34, %s5412_s24 }
 0x372   : > { %1900 = vrot.lane.b32.xlu0 %v5634_v32, %s5412_s24  ;;  %v1510_v16 = vpop.xlane.xlu0 %1509 }
 0x373   : > { %v1532_v17 = vsub.f32 %v1500_v47, %v1510_v16 }
 0x375   : > { %v1540_v19 = vmul.f32 1.442695, %v1532_v17 }
 0x376   : > { %v1513_v14 = vpop.xlane.xlu1 %1512 }
 0x377   : > { %v1533_v15 = vsub.f32 %v1501_v51, %v1513_v14 }
 0x379   : > { %v1542_v18 = vmul.f32 1.442695, %v1533_v15 }
 0x37b   : > { %5355 = vpow2.f32 %v1542_v18 }
 0x37c   : > { %5357 = vpow2.f32 %v1540_v19 }
 0x385   : > { %v5720_v20 = vpop.eup %5355 }
 0x386   : > { %v1559_v21 = vsel %vm893_vm3, %v5720_v20, 0.0  ;;  %v5724_v22 = vpop.eup %5357 }
 0x387   : > { %v1556_v23 = vsel %vm893_vm3, %v5724_v22, 0.0 }
 0x391   : > { %1560 = vadd.xlane.f32.xlu0 %v1559_v21 }
 0x395   : > { %1557 = vadd.xlane.f32.xlu1 %v1556_v23 }
 0x3d9   : > { %v1516_v24 = vpop.xlane.xlu0 %1515 }
 0x3da   : > { %v1534_v25 = vsub.f32 %v1502_v55, %v1516_v24 }
 0x3dc   : > { %v1544_v26 = vmul.f32 1.442695, %v1534_v25 }
 0x3dd   : > { %v1522_v27 = vpop.xlane.xlu1 %1521  ;;  %v1519_v29 = vpop.xlane.xlu0 %1518 }
 0x3de   : > { %5359 = vpow2.f32 %v1544_v26  ;;  %v1536_v30 = vsub.f32 %v1504_v61, %v1522_v27  ;;  %v1535_v31 = vsub.f32 %v1503_v60, %v1519_v29  ;;  %v2236_v27 = vld [vmem:[%s5542_s25] sm:$0xff]  ;;  %v2237_v29 = vld [vmem:[%s5542_s25 + $0x8] sm:$0xff] }
 0x3e0   : > { %v1548_v32 = vmul.f32 1.442695, %v1536_v30  ;;  %v1546_v33 = vmul.f32 1.442695, %v1535_v31  ;;  %v5198_v30 = vpack.c.bf16 %v2237_v29, %v2236_v27  ;;  %v2238_v31 = vld [vmem:[%s5542_s25 + $0x10] sm:$0xff]  ;;  %v5416_v27 = vmov 0  }
 0x3e1   : > { %v1528_v34 = vpop.xlane.xlu1 %1527  ;;  %v1525_v35 = vpop.xlane.xlu0 %1524 }
 0x3e2   : > { %5361 = vpow2.f32 %v1548_v32  ;;  %v1538_v38 = vsub.f32 %v1506_v5, %v1528_v34  ;;  %v1537_v39 = vsub.f32 %v1505_v4, %v1525_v35  ;;  %v2239_v32 = vld [vmem:[%s5542_s25 + $0x18] sm:$0xff]  ;;  %s6155_s25 = sld [smem:[#allocation11_spill]] (!%p4859_p5) }
 0x3e3   : > { %5363 = vpow2.f32 %v1546_v33  ;;  %v5202_v33 = vpack.c.bf16 %v2239_v32, %v2238_v31 }
 0x3e4   : > { %v1552_v40 = vmul.f32 1.442695, %v1538_v38  ;;  %v1550_v41 = vmul.f32 1.442695, %v1537_v39 }
 0x3e5   : > { %v1597_v42 = vpop.permute.xlu1 %1596  ;;  %v1531_v43 = vpop.xlane.xlu0 %1530 }
 0x3e6   : > { %5365 = vpow2.f32 %v1552_v40  ;;  %v1539_v44 = vsub.f32 %v1507_v11, %v1531_v43  ;;  %5140 = vmatpush3.msra.mxu0 %v1597_v42 }
 0x3e7   : > { %5367 = vpow2.f32 %v1550_v41  ;;  %5149 = vmatprep.subr.mxu0 %v5406_v28 }
 0x3e8   : > { %v5360_v45 = vpop.eup %5359  ;;  %v1554_v46 = vmul.f32 1.442695, %v1539_v44 }
 0x3e9   : > { %v1673_v47 = vpop.permute.xlu0 %1672  ;;  %v1562_v48 = vsel %vm893_vm3, %v5360_v45, 0.0  ;;  %v1749_v59 = vpop.permute.xlu1 %1748 }
 0x3ea   : > { %5369 = vpow2.f32 %v1554_v46  ;;  %1563 = vadd.xlane.f32.xlu1 %v1562_v48  ;;  %5145 = vmatpush3.msra.mxu1 %v1673_v47 }
 0x3eb   : > { %5154 = vmatprep.subr.mxu1 %v5406_v28 }
 0x3ec   : > { %v5362_v49 = vpop.eup %5361 }
 0x3ed   : > { %v5364_v50 = vpop.eup %5363  ;;  %v1568_v51 = vsel %vm893_vm3, %v5362_v49, 0.0  ;;  %v1825_v60 = vpop.permute.xlu1 %1824 }
 0x3ee   : > { %1569 = vadd.xlane.f32.xlu1 %v1568_v51  ;;  %v1565_v52 = vsel %vm893_vm3, %v5364_v50, 0.0  ;;  %v1901_v61 = vpop.permute.xlu0 %1900 }
 0x3ef   : > { %1566 = vadd.xlane.f32.xlu0 %v1565_v52 }
 0x3f0   : > { %v5366_v53 = vpop.eup %5365 }
 0x3f1   : > { %v5368_v54 = vpop.eup %5367  ;;  %v1574_v55 = vsel %vm893_vm3, %v5366_v53, 0.0  ;;  %v1977_v62 = vpop.permute.xlu1 %1976 }
 0x3f2   : > { %1575 = vadd.xlane.f32.xlu1 %v1574_v55  ;;  %v1571_v56 = vsel %vm893_vm3, %v5368_v54, 0.0 }
 0x3f3   : > { %1572 = vadd.xlane.f32.xlu0 %v1571_v56 }
 0x3f4   : > { %v5735_v57 = vpop.eup %5369 }
 0x3f5   : > { %v1577_v58 = vsel %vm893_vm3, %v5735_v57, 0.0 }
 0x3f7   : > { %1578 = vadd.xlane.f32.xlu0 %v1577_v58 }
 0x403   : > { %2128 = vrot.lane.b32.xlu1 %v5649_v37, %s5412_s24 }
 0x40d   : > { %2052 = vrot.lane.b32.xlu0 %v5645_v36, %s5412_s24  ;;  %s6154_s24 = scalar_lea.vmem %s6122_s9, %s5527_s17 }
 0x41e   : > { %v1561_v63 = vpop.xlane.xlu0 %1560 }
 0x41f   : > { %5371 = vrcp.f32 %v1561_v63 }
 0x422   : > { %v1558_v0 = vpop.xlane.xlu1 %1557 }
 0x423   : > { %5373 = vrcp.f32 %v1558_v0  ;;  %v5395_v0 = vld [vmem:[#allocation2 + $0x8] sm:$0xff] }
 0x429   : > { %v5372_v1 = vpop.eup %5371 }
 0x42a   : > { %v1589_v2 = vmul.f32 %v5372_v1, %v5720_v20 }
 0x42c   : > { %5147 = vmatmul.mubr.msk.f32.vlgmr.msra.gmra.mrb[12].mxu1 %vm893_vm3, %v1589_v2  ;;  %v5396_v2 = vld [vmem:[#allocation2] sm:$0xff] }
 0x42d   : > { %v5374_v3 = vpop.eup %5373  ;;  %5155 = vmatpush3.msra.mxu1 %v1825_v60  ;;  %5156 = vmatprep.mubr.msk.f32.mxu1 %vm5409_vm2, %v5406_v28 }
 0x42e   : > { %v1588_v36 = vmul.f32 %v5374_v3, %v5724_v22  ;;  %5164 = vmatprep.subr.mxu1 %v5406_v28 }
 0x430   : > { %5142 = vmatmul.mubr.msk.f32.vlgmr.msra.gmra.mrb[6].mxu0 %vm893_vm3, %v1588_v36 }
 0x431   : > { %5150 = vmatpush3.msra.mxu0 %v1749_v59  ;;  %5151 = vmatprep.mubr.msk.f32.mxu0 %vm5409_vm2, %v5406_v28  ;;  %v4683_v59 = vld [vmem:[%s6152_s1] ss:$0 sm:$0xff] }
 0x432   : > { %5159 = vmatprep.subr.mxu0 %v5406_v28 }
 0x477   : > { %v1564_v37 = vpop.xlane.xlu1 %1563 }
 0x478   : > { %5375 = vrcp.f32 %v1564_v37 }
 0x47b   : > { %v1570_v4 = vpop.xlane.xlu1 %1569 }
 0x47c   : > { %5377 = vrcp.f32 %v1570_v4  ;;  %v1567_v5 = vpop.xlane.xlu0 %1566 }
 0x47d   : > { %5379 = vrcp.f32 %v1567_v5 }
 0x47f   : > { %v1576_v6 = vpop.xlane.xlu1 %1575 }
 0x480   : > { %5381 = vrcp.f32 %v1576_v6  ;;  %v1573_v7 = vpop.xlane.xlu0 %1572 }
 0x481   : > { %5383 = vrcp.f32 %v1573_v7 }
 0x482   : > { %v5376_v8 = vpop.eup %5375 }
 0x483   : > { %v1590_v9 = vmul.f32 %v5376_v8, %v5360_v45  ;;  %v2129_v20 = vpop.permute.xlu1 %2128  ;;  %v2380_v8 = vld [vmem:[%s5560_s5] sm:$0xff] }
 0x484   : > { %v1579_v10 = vpop.xlane.xlu0 %1578 }
 0x485   : > { %5385 = vrcp.f32 %v1579_v10  ;;  %5152 = vmatmul.mubr.msk.f32.vlgmr.msra.gmra.mrb[8].mxu0 %vm893_vm3, %v1590_v9  ;;  %v2388_v9 = vld [vmem:[%s5560_s5 + $0x40] sm:$0xff]  ;;  %v2381_v10 = vld [vmem:[%s5560_s5 + $0x8] sm:$0xff] }
 0x486   : > { %v5378_v11 = vpop.eup %5377  ;;  %5160 = vmatpush3.msra.mxu0 %v1901_v61  ;;  %5161 = vmatprep.mubr.msk.f32.mxu0 %vm5409_vm2, %v5406_v28 }
 0x487   : > { %v5380_v12 = vpop.eup %5379  ;;  %v1592_v13 = vmul.f32 %v5378_v11, %v5362_v49  ;;  %5169 = vmatprep.subr.mxu0 %v5406_v28  ;;  %v4689_v11 = vcombine.high %v2380_v8, %v2388_v9 }
 0x488   : > { %v1591_v14 = vmul.f32 %v5380_v12, %v5364_v50  ;;  %v2053_v15 = vpop.permute.xlu0 %2052  ;;  %v2389_v12 = vld [vmem:[%s5560_s5 + $0x48] sm:$0xff] }
 0x489   : > { %5162 = vmatmul.mubr.msk.f32.vlgmr.msra.gmra.mrb[10].mxu0 %vm893_vm3, %v1592_v13  ;;  %v4688_v13 = vcombine.low %v2380_v8, %v2388_v9 }
 0x48a   : > { %v5382_v16 = vpop.eup %5381  ;;  %5157 = vmatmul.mubr.msk.f32.vlgmr.msra.gmra.mrb[14].mxu1 %vm893_vm3, %v1591_v14  ;;  %5170 = vmatpush3.msra.mxu0 %v2053_v15  ;;  %v4690_v14 = vcombine.low %v2381_v10, %v2389_v12  ;;  %v4691_v15 = vcombine.high %v2381_v10, %v2389_v12  ;;  %v2400_v10 = vld [vmem:[%s5560_s5 + $0xa0] sm:$0xff]  ;;  %v2401_v12 = vld [vmem:[%s5560_s5 + $0xa8] sm:$0xff] }
 0x48b   : > { %v5384_v17 = vpop.eup %5383  ;;  %v1594_v18 = vmul.f32 %v5382_v16, %v5366_v53  ;;  %5165 = vmatpush3.msra.mxu1 %v1977_v62  ;;  %5166 = vmatprep.mubr.msk.f32.mxu1 %vm5409_vm2, %v5406_v28  ;;  %v2396_v16 = vld [vmem:[%s5560_s5 + $0x80] sm:$0xff] }
 0x48c   : > { %v1593_v19 = vmul.f32 %v5384_v17, %v5368_v54  ;;  %5171 = vmatprep.mubr.msk.f32.mxu0 %vm5409_vm2, %v5406_v28  ;;  %5174 = vmatprep.subr.mxu1 %v5406_v28  ;;  %v2404_v17 = vld [vmem:[%s5560_s5 + $0xc0] sm:$0xff] }
 0x48d   : > { %5172 = vmatmul.mubr.msk.f32.vlgmr.msra.gmra.mrb[12].mxu0 %vm893_vm3, %v1594_v18  ;;  %5199 = vmatprep.subr.bf16.mxu0 %v5198_v30  ;;  %v2397_v18 = vld [vmem:[%s5560_s5 + $0x88] sm:$0xff] }
 0x48e   : > { %5167 = vmatmul.mubr.msk.f32.vlgmr.msra.gmra.mrb[16].mxu1 %vm893_vm3, %v1593_v19  ;;  %5201 = vmatpush3.bf16.msra.mxu0 %v5198_v30  ;;  %v4705_v19 = vcombine.high %v2396_v16, %v2404_v17  ;;  %v2391_v30 = vld [vmem:[%s5560_s5 + $0x58] sm:$0xff] }
 0x48f   : > { %v5386_v21 = vpop.eup %5385  ;;  %5175 = vmatpush3.msra.mxu1 %v2129_v20  ;;  %5176 = vmatprep.mubr.msk.f32.mxu1 %vm5409_vm2, %v5406_v28  ;;  %v2405_v20 = vld [vmem:[%s5560_s5 + $0xc8] sm:$0xff] }
 0x490   : > { %v1595_v22 = vmul.f32 %v5386_v21, %v5735_v57  ;;  %5203 = vmatprep.subr.bf16.mxu0 %v5202_v33  ;;  %2659 = vmatprep.subr.bf16.mxu1 %v4689_v11  ;;  %v4704_v21 = vcombine.low %v2396_v16, %v2404_v17  ;;  %v2408_v11 = vld [vmem:[%s5560_s5 + $0xe0] sm:$0xff] }
 0x491   : > { %v4713_v16 = vcombine.high %v2400_v10, %v2408_v11 }
 0x492   : > { %5177 = vmatmul.mubr.msk.f32.vlgmr.msra.gmra.mrb[18].mxu1 %vm893_vm3, %v1595_v22  ;;  %5205 = vmatpush3.bf16.msra.mxu0 %v5202_v33  ;;  %v4706_v22 = vcombine.low %v2397_v18, %v2405_v20 }
 0x493   : > { %2702 = vmatprep.subr.bf16.mxu0 %v4691_v15  ;;  %2660 = vmatpush1.bf16.msra.mxu1 %v4688_v13  ;;  %v2409_v13 = vld [vmem:[%s5560_s5 + $0xe8] sm:$0xff] }
 0x494   : > { %2661 = vmatprep.subr.bf16.mxu1 %v4705_v19  ;;  %2691 = vmatprep.mubr.bf16.mxu1 %v5416_v27  ;;  %v4715_v17 = vcombine.high %v2401_v12, %v2409_v13  ;;  %v2394_v19 = vld [vmem:[%s5560_s5 + $0x70] sm:$0xff] }
 0x497   : > { %2662 = vmatpush1.bf16.msra.mxu1 %v4704_v21  ;;  %v2395_v21 = vld [vmem:[%s5560_s5 + $0x78] sm:$0xff] }
 0x4ff   : > { %v1744_v23 = vpop.f32.mrb[12].mxu1 }
 0x500   : > { %v5148_v24 = vpop.f32.mrb[13].mxu1 }
 0x501   : > { %v2382_v24 = vld [vmem:[%s5560_s5 + $0x10] sm:$0xff] }
 0x503   : > { %v1668_v25 = vpop.f32.mrb[6].mxu0 }
 0x504   : > { %v5143_v26 = vpop.f32.mrb[7].mxu0 }
 0x505   : > { %v2383_v26 = vld [vmem:[%s5560_s5 + $0x18] sm:$0xff] }
 0x506   : > { %v4694_v32 = vcombine.low %v2383_v26, %v2391_v30  ;;  %v4695_v33 = vcombine.high %v2383_v26, %v2391_v30  ;;  %v2402_v26 = vld [vmem:[%s5560_s5 + $0xb0] sm:$0xff]  ;;  %v2403_v30 = vld [vmem:[%s5560_s5 + $0xb8] sm:$0xff] }
 0x558   : > { %v1820_v34 = vpop.f32.mrb[8].mxu0 }
 0x559   : > { %v5153_v28 = vpop.f32.mrb[9].mxu0  ;;  %2206 = vrot.lane.b32.xlu0 %v1820_v34, %s5413_s27 }
 0x55c   : > { %v1972_v35 = vpop.f32.mrb[10].mxu0 }
 0x55d   : > { %v1896_v38 = vpop.f32.mrb[14].mxu1  ;;  %2214 = vrot.lane.b32.xlu0 %v1972_v35, %s5414_s18  ;;  %v5163_v39 = vpop.f32.mrb[11].mxu0 }
 0x55e   : > { %2208 = vrot.lane.b32.xlu1 %v1896_v38, %s5413_s27  ;;  %v5158_v40 = vpop.f32.mrb[15].mxu1 }
 0x560   : > { %v2124_v41 = vpop.f32.mrb[12].mxu0 }
 0x561   : > { %v2048_v42 = vpop.f32.mrb[16].mxu1  ;;  %2222 = vrot.lane.b32.xlu0 %v2124_v41, %s5415_s16  ;;  %v5173_v43 = vpop.f32.mrb[13].mxu0 }
 0x562   : > { %2216 = vrot.lane.b32.xlu1 %v2048_v42, %s5414_s18  ;;  %v5168_v44 = vpop.f32.mrb[17].mxu1 }
 0x565   : > { %v2200_v45 = vpop.f32.mrb[18].mxu1 }
 0x566   : > { %2224 = vrot.lane.b32.xlu1 %v2200_v45, %s5415_s16  ;;  %v5178_v46 = vpop.f32.mrb[19].mxu1 }
 0x5cb   : > { %v2207_v47 = vpop.permute.xlu0 %2206 }
 0x5cc   : > { %v2228_v50 = vsel %vm893_vm3, %v1668_v25, %v2207_v47  ;;  %v2390_v25 = vld [vmem:[%s5560_s5 + $0x50] sm:$0xff] }
 0x5cd   : > { %v4693_v29 = vcombine.high %v2382_v24, %v2390_v25  ;;  %v4692_v31 = vcombine.low %v2382_v24, %v2390_v25 }
 0x5cf   : > { %v2215_v48 = vpop.permute.xlu0 %2214  ;;  %2745 = vmatprep.subr.bf16.mxu1 %v4693_v29  ;;  %v2410_v29 = vld [vmem:[%s5560_s5 + $0xf0] sm:$0xff] }
 0x5d0   : > { %v2209_v49 = vpop.permute.xlu1 %2208  ;;  %v2231_v51 = vsel %vm2230_vm4, %v2228_v50, %v2215_v48 }
 0x5d1   : > { %v2229_v55 = vsel %vm893_vm3, %v1744_v23, %v2209_v49  ;;  %v4707_v23 = vcombine.high %v2397_v18, %v2405_v20  ;;  %v2386_v18 = vld [vmem:[%s5560_s5 + $0x30] sm:$0xff]  ;;  %v2387_v20 = vld [vmem:[%s5560_s5 + $0x38] sm:$0xff] }
 0x5d2   : > { %v4701_v24 = vcombine.high %v2386_v18, %v2394_v19  ;;  %v4703_v25 = vcombine.high %v2387_v20, %v2395_v21 }
 0x5d3   : > { %v2223_v52 = vpop.permute.xlu0 %2222 }
 0x5d4   : > { %v2217_v53 = vpop.permute.xlu1 %2216  ;;  %v2234_v54 = vsel %vm2233_vm5, %v2231_v51, %v2223_v52  ;;  %v4686_v52 = vld [vmem:[%s6153_s4] ss:$0 sm:$0xff] }
 0x5d5   : > { %5187 = vmatprep.mubr.msk.f32.mxu0 %vm795_vm1, %v2234_v54  ;;  %v2232_v56 = vsel %vm2230_vm4, %v2229_v55, %v2217_v53 }
 0x5d8   : > { %v2225_v57 = vpop.permute.xlu1 %2224 }
 0x5d9   : > { %v2235_v58 = vsel %vm2233_vm5, %v2232_v56, %v2225_v57  ;;  %v4687_v57 = vld [vmem:[%s6154_s24] ss:$0 sm:$0xff] }
 0x5da   : > { %5188 = vmatmul.mubr.msk.f32.vlgmr.msra.gmra.mrb[14].mxu0 %vm795_vm1, %v2235_v58 }
 0x5db   : > { %2703 = vmatpush1.bf16.msra.mxu0 %v4690_v14  ;;  %2734 = vmatprep.mubr.bf16.mxu0 %v5416_v27 }
 0x5dc   : > { %2704 = vmatprep.subr.bf16.mxu0 %v4707_v23  ;;  %v4714_v23 = vcombine.low %v2401_v12, %v2409_v13 }
 0x5df   : > { %2705 = vmatpush1.bf16.msra.mxu0 %v4706_v22  ;;  %v4712_v22 = vcombine.low %v2400_v10, %v2408_v11  ;;  %v5911_v11 = vld [vmem:[%s5566_s26 + $0x8] sm:$0xff] }
 0x5e0   : > { %2788 = vmatprep.subr.bf16.mxu0 %v4695_v33  ;;  %v4702_v33 = vcombine.low %v2387_v20, %v2395_v21 }
 0x6ad   : > { %v5189_v60 = vpop.f32.mrb[14].mxu0 }
 0x6ae   : > { %v2325_v61 = vadd.f32 %v5189_v60, %v4683_v59  ;;  %v2319_v62 = vpop.f32.mrb[15].mxu0  ;;  %v2406_v60 = vld [vmem:[%s5560_s5 + $0xd0] sm:$0xff] }
 0x6af   : > { %v2320_v63 = vadd.f32 %v4683_v59, %v2319_v62  ;;  %v2398_v59 = vld [vmem:[%s5560_s5 + $0x90] sm:$0xff]  ;;  %v2407_v62 = vld [vmem:[%s5560_s5 + $0xd8] sm:$0xff] }
 0x6b0   : > { %v5783_v1 = vadd.f32 %v5395_v0, %v2325_v61  ;;  %v2399_v61 = vld [vmem:[%s5560_s5 + $0x98] sm:$0xff] }
 0x6b1   : > { %v5785_v3 = vadd.f32 %v5396_v2, %v2320_v63  ;;  %v4709_v2 = vcombine.high %v2398_v59, %v2406_v60 }
 0x6b2   : > { %v2335_v36 = vsel %vm795_vm1, %v5783_v1, 0.0  ;;  %v2342_v6 = vmul.f32 %v5783_v1, %v5783_v1 }
 0x6b3   : > { %2336 = vadd.xlane.f32.xlu1 %v2335_v36  ;;  %v2332_v37 = vsel %vm795_vm1, %v5785_v3, 0.0  ;;  %v2341_v4 = vmul.f32 %v5785_v3, %v5785_v3  ;;  %v2384_v36 = vld [vmem:[%s5560_s5 + $0x20] sm:$0xff] }
 0x6b4   : > { %2333 = vadd.xlane.f32.xlu0 %v2332_v37  ;;  %v2346_v7 = vsel %vm795_vm1, %v2342_v6, 0.0  ;;  %v2392_v37 = vld [vmem:[%s5560_s5 + $0x60] sm:$0xff]  ;;  %v4708_v6 = vcombine.low %v2398_v59, %v2406_v60  ;;  %v5248_v59 = vld [vmem:[%s5572_s29 + $0xe8] sm:$0xff]  }
 0x6b5   : > { %v2343_v5 = vsel %vm795_vm1, %v2341_v4, 0.0  ;;  %v2385_v4 = vld [vmem:[%s5560_s5 + $0x28] sm:$0xff]  ;;  %v4697_v8 = vcombine.high %v2384_v36, %v2392_v37  ;;  %v4696_v14 = vcombine.low %v2384_v36, %v2392_v37  ;;  %v5255_v36 = vld [vmem:[%s5572_s29 + $0x78] sm:$0xff]  }
 0x6b6   : > { %v5249_v60 = vld [vmem:[%s5572_s29 + $0x28] sm:$0xff]   ;;  %v5256_v37 = vld [vmem:[%s5572_s29 + $0xf8] sm:$0xff]  }
 0x6b8   : > { %2344 = vadd.xlane.f32.xlu0 %v2343_v5  ;;  %v2393_v5 = vld [vmem:[%s5560_s5 + $0x68] sm:$0xff] }
 0x6b9   : > { %v4699_v9 = vcombine.high %v2385_v4, %v2393_v5  ;;  %v4698_v15 = vcombine.low %v2385_v4, %v2393_v5  ;;  %v5257_v4 = vld [vmem:[%s5572_s29 + $0x38] sm:$0xff]  }
 0x6ba   : > { %v5258_v5 = vld [vmem:[%s5572_s29 + $0xb8] sm:$0xff]  }
 0x6bc   : > { %2347 = vadd.xlane.f32.xlu0 %v2346_v7  ;;  %v4710_v7 = vcombine.low %v2399_v61, %v2407_v62 }
 0x740   : > { %v2337_v35 = vpop.xlane.xlu1 %2336 }
 0x741   : > { %v2334_v34 = vpop.xlane.xlu0 %2333  ;;  %v2340_v39 = vmul.f32 0.03125, %v2337_v35  ;;  %v4716_v35 = vcombine.low %v2402_v26, %v2410_v29 }
 0x742   : > { %v2339_v28 = vmul.f32 0.03125, %v2334_v34  ;;  %v4717_v34 = vcombine.high %v2402_v26, %v2410_v29 }
 0x743   : > { %v2352_v44 = vmul.f32 %v2340_v39, %v2340_v39  ;;  %v2356_v53 = vsub.f32 %v5783_v1, %v2340_v39  ;;  %v5227_v39 = vld [vmem:[%s5572_s29 + $0x40] sm:$0xff]  }
 0x744   : > { %v2351_v40 = vmul.f32 %v2339_v28, %v2339_v28  ;;  %v2355_v49 = vsub.f32 %v5785_v3, %v2339_v28  ;;  %v4711_v3 = vcombine.high %v2399_v61, %v2407_v62  ;;  %v5250_v61 = vld [vmem:[%s5572_s29 + $0xa8] sm:$0xff]   ;;  %v5251_v62 = vld [vmem:[%s5572_s29 + $0x70] sm:$0xff]  }
 0x745   : > { %v2345_v38 = vpop.xlane.xlu0 %2344 }
 0x746   : > { %v2349_v41 = vmul.f32 0.03125, %v2345_v38 }
 0x748   : > { %v2353_v42 = vsub.f32 %v2349_v41, %v2351_v40  ;;  %v5228_v40 = vld [vmem:[%s5572_s29 + $0xc0] sm:$0xff]  }
 0x749   : > { %v2348_v43 = vpop.xlane.xlu0 %2347  ;;  %v5229_v41 = vld [vmem:[%s5572_s29] sm:$0xff]  }
 0x74a   : > { %v2357_v45 = vadd.f32 1e-05, %v2353_v42  ;;  %v2350_v46 = vmul.f32 0.03125, %v2348_v43  ;;  %v5230_v42 = vld [vmem:[%s5572_s29 + $0x80] sm:$0xff]   ;;  %v5231_v43 = vld [vmem:[%s5572_s29 + $0x48] sm:$0xff]  }
 0x74c   : > { %5387 = vrsqrt.f32 %v2357_v45  ;;  %v2354_v47 = vsub.f32 %v2350_v46, %v2352_v44  ;;  %v5232_v44 = vld [vmem:[%s5572_s29 + $0xc8] sm:$0xff]   ;;  %v5235_v46 = vld [vmem:[%s5572_s29 + $0x50] sm:$0xff]  }
 0x74d   : > { %v5234_v45 = vld [vmem:[%s5572_s29 + $0x88] sm:$0xff]  }
 0x74e   : > { %v2358_v48 = vadd.f32 1e-05, %v2354_v47  ;;  %v5236_v47 = vld [vmem:[%s5572_s29 + $0xd0] sm:$0xff]  }
 0x750   : > { %5389 = vrsqrt.f32 %v2358_v48  ;;  %v5237_v48 = vld [vmem:[%s5572_s29 + $0x10] sm:$0xff]  }
 0x756   : > { %v5388_v50 = vpop.eup %5387 }
 0x757   : > { %v2361_v51 = vmul.f32 %v5388_v50, %v2355_v49  ;;  %v5238_v49 = vld [vmem:[%s5572_s29 + $0x90] sm:$0xff]   ;;  %v5239_v50 = vld [vmem:[%s5572_s29 + $0x58] sm:$0xff]  }
 0x759   : > { %v2369_v55 = vmul.f32 %v4686_v52, %v2361_v51  ;;  %v5240_v51 = vld [vmem:[%s5572_s29 + $0xd8] sm:$0xff]  }
 0x75a   : > { %v5390_v54 = vpop.eup %5389 }
 0x75b   : > { %v2362_v56 = vmul.f32 %v5390_v54, %v2356_v53  ;;  %v5827_v63 = vadd.f32 %v4687_v57, %v2369_v55  ;;  %v5242_v53 = vld [vmem:[%s5572_s29 + $0x98] sm:$0xff]   ;;  %v5243_v54 = vld [vmem:[%s5572_s29 + $0x60] sm:$0xff]  }
 0x75c   : > { %v5244_v55 = vld [vmem:[%s5572_s29 + $0xe0] sm:$0xff]  }
 0x75d   : > { %v2370_v58 = vmul.f32 %v4686_v52, %v2362_v56  ;;  %v5241_v52 = vld [vmem:[%s5572_s29 + $0x18] sm:$0xff]   ;;  %v5245_v56 = vld [vmem:[%s5572_s29 + $0x20] sm:$0xff]  }
 0x75f   : > { %v5829_v0 = vadd.f32 %v4687_v57, %v2370_v58  ;;  %v5246_v57 = vld [vmem:[%s5572_s29 + $0xa0] sm:$0xff]   ;;  %v5247_v58 = vld [vmem:[%s5572_s29 + $0x68] sm:$0xff]  }
 0x761   : > { %v5833_v1 = vpack.c.bf16 %v5829_v0, %v5827_v63 }
 0x763   : > { %4720 = vmatmul.mubr.msk.bf16.vlgmr.msra.gmra.mrb[20].mxu1 %vm795_vm1, %v5833_v1  ;;  %4721 = vmatmul.mubr.msk.bf16.vlgmr.msra.gmra.mrb[16].mxu0 %vm795_vm1, %v5833_v1 }
 0x764   : > { %2746 = vmatpush1.bf16.msra.mxu1 %v4692_v31  ;;  %2789 = vmatpush1.bf16.msra.mxu0 %v4694_v32  ;;  %v2411_v31 = vld [vmem:[%s5560_s5 + $0xf8] sm:$0xff]  ;;  %v4700_v32 = vcombine.low %v2386_v18, %v2394_v19 }
 0x765   : > { %2747 = vmatprep.subr.bf16.mxu1 %v4709_v2  ;;  %2790 = vmatprep.subr.bf16.mxu0 %v4711_v3  ;;  %v4719_v28 = vcombine.high %v2403_v30, %v2411_v31  ;;  %v4718_v38 = vcombine.low %v2403_v30, %v2411_v31  ;;  %v5253_v2 = vld [vmem:[%s5572_s29 + $0x30] sm:$0xff]  }
 0x766   : > { %2777 = vmatprep.mubr.bf16.mxu1 %v5416_v27  ;;  %2820 = vmatprep.mubr.bf16.mxu0 %v5416_v27  ;;  %v5254_v3 = vld [vmem:[%s5572_s29 + $0xb0] sm:$0xff]  }
 0x768   : > { %2748 = vmatpush1.bf16.msra.mxu1 %v4708_v6  ;;  %2791 = vmatpush1.bf16.msra.mxu0 %v4710_v7  ;;  %v5259_v6 = vld [vmem:[%s5572_s29 + $0x140] sm:$0xff]  }
 0x769   : > { %2831 = vmatprep.subr.bf16.mxu1 %v4697_v8  ;;  %2874 = vmatprep.subr.bf16.mxu0 %v4699_v9  ;;  %v5260_v7 = vld [vmem:[%s5572_s29 + $0x1c0] sm:$0xff]   ;;  %v2416_v8 = vlaneseq }
 0x76b   : > { %4722 = vmatmul.mubr.msk.bf16.vlgmr.msra.gmra.mrb[24].mxu1 %vm795_vm1, %v5833_v1  ;;  %4723 = vmatmul.mubr.msk.bf16.vlgmr.msra.gmra.mrb[20].mxu0 %vm795_vm1, %v5833_v1  ;;  %v5907_v9 = vshrl.u32 %v2416_v8, 7 }
 0x76c   : > { %2832 = vmatpush1.bf16.msra.mxu1 %v4696_v14  ;;  %2875 = vmatpush1.bf16.msra.mxu0 %v4698_v15  ;;  %v2412_v15 = vld [vmem:[%s5566_s26] sm:$0xff] }
 0x76d   : > { %2833 = vmatprep.subr.bf16.mxu1 %v4713_v16  ;;  %2876 = vmatprep.subr.bf16.mxu0 %v4715_v17  ;;  %v2442_v10 = vsub.s32 6, %v5907_v9  ;;  %v2418_v13 = vsub.s32 0, %v5907_v9  ;;  %v2426_v14 = vsub.s32 2, %v5907_v9  ;;  %v2422_v16 = vsub.s32 1, %v5907_v9 }
 0x76e   : > { %2863 = vmatprep.mubr.bf16.mxu1 %v5416_v27  ;;  %2906 = vmatprep.mubr.bf16.mxu0 %v5416_v27  ;;  %v2430_v17 = vsub.s32 3, %v5907_v9  ;;  %v2446_v26 = vsub.s32 7, %v5907_v9 }
 0x76f   : > { %v5914_v12 = vrot.slane %v5911_v11, %v2442_v10  ;;  %v2419_v18 = vrot.slane %v2412_v15, %v2418_v13  ;;  %v2427_v19 = vrot.slane %v2412_v15, %v2426_v14  ;;  %v2423_v20 = vrot.slane %v2412_v15, %v2422_v16 }
 0x770   : > { %2834 = vmatpush1.bf16.msra.mxu1 %v4712_v22  ;;  %2877 = vmatpush1.bf16.msra.mxu0 %v4714_v23  ;;  %v2431_v21 = vrot.slane %v2412_v15, %v2430_v17  ;;  %v2434_v22 = vsub.s32 4, %v5907_v9 }
 0x771   : > { %2917 = vmatprep.subr.bf16.mxu1 %v4701_v24  ;;  %2960 = vmatprep.subr.bf16.mxu0 %v4703_v25  ;;  %v2438_v25 = vsub.s32 5, %v5907_v9 }
 0x773   : > { %4724 = vmatmul.mubr.msk.bf16.vlgmr.msra.gmra.mrb[28].mxu1 %vm795_vm1, %v5833_v1  ;;  %4725 = vmatmul.mubr.msk.bf16.vlgmr.msra.gmra.mrb[24].mxu0 %vm795_vm1, %v5833_v1 }
 0x774   : > { %2918 = vmatpush1.bf16.msra.mxu1 %v4700_v32  ;;  %2961 = vmatpush1.bf16.msra.mxu0 %v4702_v33 }
 0x775   : > { %2919 = vmatprep.subr.bf16.mxu1 %v4717_v34  ;;  %2962 = vmatprep.subr.bf16.mxu0 %v4719_v28 }
 0x776   : > { %2949 = vmatprep.mubr.bf16.mxu1 %v5416_v27  ;;  %2992 = vmatprep.mubr.bf16.mxu0 %v5416_v27  ;;  %v5233_v27 = vld [vmem:[%s5572_s29 + $0x8] sm:$0xff]  }
 0x778   : > { %2920 = vmatpush1.bf16.msra.mxu1 %v4716_v35  ;;  %2963 = vmatpush1.bf16.msra.mxu0 %v4718_v38 }
 0x779   : > { %4912 = vmatprep.subr.bf16.mxu1 %v5227_v39  ;;  %4934 = vmatprep.subr.bf16.mxu0 %v5228_v40 }
 0x77b   : > { %4726 = vmatmul.mubr.msk.bf16.vlgmr.msra.gmra.mrb[32].mxu1 %vm795_vm1, %v5833_v1  ;;  %4727 = vmatmul.mubr.msk.bf16.vlgmr.msra.gmra.mrb[28].mxu0 %vm795_vm1, %v5833_v1  ;;  %v5252_v1 = vld [vmem:[%s5572_s29 + $0xf0] sm:$0xff]  }
 0x77c   : > { %4913 = vmatpush3.bf16.msra.mxu1 %v5229_v41  ;;  %4935 = vmatpush3.bf16.msra.mxu0 %v5230_v42  ;;  %v2435_v42 = vrot.slane %v2412_v15, %v2434_v22 }
 0x77d   : > { %4914 = vmatprep.subr.bf16.mxu1 %v5231_v43  ;;  %4936 = vmatprep.subr.bf16.mxu0 %v5232_v44  ;;  %v2443_v43 = vrot.slane %v2412_v15, %v2442_v10 }
 0x780   : > { %4915 = vmatpush3.bf16.msra.mxu1 %v5233_v27  ;;  %4937 = vmatpush3.bf16.msra.mxu0 %v5234_v45  ;;  %v2439_v45 = vrot.slane %v2412_v15, %v2438_v25 }
 0x781   : > { %4916 = vmatprep.subr.bf16.mxu1 %v5235_v46  ;;  %4938 = vmatprep.subr.bf16.mxu0 %v5236_v47  ;;  %v2447_v46 = vrot.slane %v2412_v15, %v2446_v26  ;;  %v2459_v15 = vrot.slane %v5911_v11, %v2426_v14  ;;  %v2463_v14 = vrot.slane %v5911_v11, %v2430_v17 }
 0x784   : > { %4917 = vmatpush3.bf16.msra.mxu1 %v5237_v48  ;;  %4939 = vmatpush3.bf16.msra.mxu0 %v5238_v49 }
 0x785   : > { %4918 = vmatprep.subr.bf16.mxu1 %v5239_v50  ;;  %4940 = vmatprep.subr.bf16.mxu0 %v5240_v51 }
 0x788   : > { %4919 = vmatpush3.bf16.msra.mxu1 %v5241_v52  ;;  %4941 = vmatpush3.bf16.msra.mxu0 %v5242_v53 }
 0x789   : > { %4920 = vmatprep.subr.bf16.mxu1 %v5243_v54  ;;  %4942 = vmatprep.subr.bf16.mxu0 %v5244_v55 }
 0x78c   : > { %4921 = vmatpush3.bf16.msra.mxu1 %v5245_v56  ;;  %4943 = vmatpush3.bf16.msra.mxu0 %v5246_v57 }
 0x78d   : > { %4922 = vmatprep.subr.bf16.mxu1 %v5247_v58  ;;  %4944 = vmatprep.subr.bf16.mxu0 %v5248_v59 }
 0x790   : > { %4923 = vmatpush3.bf16.msra.mxu1 %v5249_v60  ;;  %4945 = vmatpush3.bf16.msra.mxu0 %v5250_v61  ;;  %v5261_v61 = vld [vmem:[%s5572_s29 + $0x100] sm:$0xff]  }
 0x791   : > { %4924 = vmatprep.subr.bf16.mxu1 %v5251_v62  ;;  %4946 = vmatprep.subr.bf16.mxu0 %v5252_v1  ;;  %v5262_v62 = vld [vmem:[%s5572_s29 + $0x180] sm:$0xff]  }
 0x794   : > { %4925 = vmatpush3.bf16.msra.mxu1 %v5253_v2  ;;  %4947 = vmatpush3.bf16.msra.mxu0 %v5254_v3 }
 0x795   : > { %4926 = vmatprep.subr.bf16.mxu1 %v5255_v36  ;;  %4948 = vmatprep.subr.bf16.mxu0 %v5256_v37  ;;  %v5263_v37 = vld [vmem:[%s5572_s29 + $0x148] sm:$0xff]  }
 0x798   : > { %4927 = vmatpush3.bf16.msra.mxu1 %v5257_v4  ;;  %4949 = vmatpush3.bf16.msra.mxu0 %v5258_v5  ;;  %v5264_v4 = vld [vmem:[%s5572_s29 + $0x1c8] sm:$0xff]   ;;  %v2451_v5 = vrot.slane %v5911_v11, %v2418_v13  ;;  %v2455_v13 = vrot.slane %v5911_v11, %v2422_v16  ;;  %v5268_v16 = vld [vmem:[%s5572_s29 + $0x1d0] sm:$0xff]  }
 0x799   : > { %4956 = vmatprep.subr.bf16.mxu1 %v5259_v6  ;;  %4978 = vmatprep.subr.bf16.mxu0 %v5260_v7 }
 0x836   : > { %v2693_v23 = vpop.f32.mrb[20].mxu1  ;;  %v2736_v24 = vpop.f32.mrb[16].mxu0 }
 0x837   : > { %v2694_v29 = vadd.f32 %v2693_v23, %v2419_v18  ;;  %v2737_v30 = vadd.f32 %v2736_v24, %v2427_v19  ;;  %v2695_v31 = vpop.f32.mrb[21].mxu1  ;;  %v2738_v32 = vpop.f32.mrb[17].mxu0 }
 0x838   : > { %v2696_v33 = vadd.f32 %v2695_v31, %v2423_v20  ;;  %v2739_v34 = vadd.f32 %v2738_v32, %v2431_v21  ;;  %v2697_v28 = vpop.f32.mrb[22].mxu1  ;;  %v2740_v35 = vpop.f32.mrb[18].mxu0 }
 0x839   : > { %v2698_v38 = vadd.f32 %v2697_v28, %v2419_v18  ;;  %v2741_v39 = vadd.f32 %v2740_v35, %v2427_v19  ;;  %v2699_v40 = vpop.f32.mrb[23].mxu1  ;;  %v2742_v41 = vpop.f32.mrb[19].mxu0  ;;  %v3003_v47 = vmax.f32 %v2694_v29, 0.0  ;;  %v3005_v48 = vmax.f32 %v2737_v30, 0.0  ;;  %v5265_v29 = vld [vmem:[%s5572_s29 + $0x108] sm:$0xff]   ;;  %v5267_v28 = vld [vmem:[%s5572_s29 + $0x150] sm:$0xff]  }
 0x83a   : > { %v2700_v44 = vadd.f32 %v2699_v40, %v2423_v20  ;;  %v2743_v27 = vadd.f32 %v2742_v41, %v2431_v21  ;;  %v3004_v51 = vmax.f32 %v2696_v33, 0.0  ;;  %v3006_v52 = vmax.f32 %v2739_v34, 0.0  ;;  %v5266_v30 = vld [vmem:[%s5572_s29 + $0x188] sm:$0xff]  }
 0x83b   : > { %v3019_v49 = vmax.f32 %v2698_v38, 0.0  ;;  %v3021_v50 = vmax.f32 %v2741_v39, 0.0 }
 0x83c   : > { %v3020_v53 = vmax.f32 %v2700_v44, 0.0  ;;  %v3022_v54 = vmax.f32 %v2743_v27, 0.0 }
 0x83d   : > { %v3035_v55 = vpack.c.bf16 %v3019_v49, %v3003_v47  ;;  %v3037_v56 = vpack.c.bf16 %v3021_v50, %v3005_v48 }
 0x83e   : > { %v3036_v57 = vpack.c.bf16 %v3020_v53, %v3004_v51  ;;  %v3038_v58 = vpack.c.bf16 %v3022_v54, %v3006_v52  ;;  %v2779_v59 = vpop.f32.mrb[24].mxu1  ;;  %v2822_v60 = vpop.f32.mrb[20].mxu0  ;;  %v5271_v51 = vld [vmem:[%s5572_s29 + $0x158] sm:$0xff]  }
 0x83f   : > { %v2780_v1 = vadd.f32 %v2779_v59, %v2435_v42  ;;  %v2823_v2 = vadd.f32 %v2822_v60, %v2443_v43  ;;  %v2781_v3 = vpop.f32.mrb[25].mxu1  ;;  %v2824_v36 = vpop.f32.mrb[21].mxu0  ;;  %v5272_v52 = vld [vmem:[%s5572_s29 + $0x1d8] sm:$0xff]  }
 0x840   : > { %v2782_v6 = vadd.f32 %v2781_v3, %v2439_v45  ;;  %v2825_v7 = vadd.f32 %v2824_v36, %v2447_v46  ;;  %v2783_v8 = vpop.f32.mrb[26].mxu1  ;;  %v2826_v10 = vpop.f32.mrb[22].mxu0  ;;  %4114 = vmatprep.mubr.bf16.mxu1 %v3036_v57  ;;  %4155 = vmatprep.mubr.bf16.mxu0 %v3038_v58  ;;  %v5273_v3 = vld [vmem:[%s5572_s29 + $0x118] sm:$0xff]  }
 0x841   : > { %v2784_v18 = vadd.f32 %v2783_v8, %v2435_v42  ;;  %v2827_v19 = vadd.f32 %v2826_v10, %v2443_v43  ;;  %v2785_v20 = vpop.f32.mrb[27].mxu1  ;;  %v2828_v21 = vpop.f32.mrb[23].mxu0  ;;  %4115 = vmatmul.mubr.bf16.vlgmr.msra.gmra.mrb[36].mxu1 %v3035_v55  ;;  %4156 = vmatmul.mubr.bf16.vlgmr.msra.gmra.mrb[32].mxu0 %v3037_v56  ;;  %v3007_v31 = vmax.f32 %v2780_v1, 0.0  ;;  %v3009_v32 = vmax.f32 %v2823_v2, 0.0  ;;  %v5274_v36 = vld [vmem:[%s5572_s29 + $0x198] sm:$0xff]  }
 0x842   : > { %v2786_v23 = vadd.f32 %v2785_v20, %v2439_v45  ;;  %v2829_v24 = vadd.f32 %v2828_v21, %v2447_v46  ;;  %4957 = vmatpush3.bf16.msra.mxu1 %v5261_v61  ;;  %4979 = vmatpush3.bf16.msra.mxu0 %v5262_v62  ;;  %v3008_v35 = vmax.f32 %v2782_v6, 0.0  ;;  %v3010_v38 = vmax.f32 %v2825_v7, 0.0  ;;  %v5269_v45 = vld [vmem:[%s5572_s29 + $0x110] sm:$0xff]  }
 0x843   : > { %v3023_v33 = vmax.f32 %v2784_v18, 0.0  ;;  %v3025_v34 = vmax.f32 %v2827_v19, 0.0  ;;  %4958 = vmatprep.subr.bf16.mxu1 %v5263_v37  ;;  %4980 = vmatprep.subr.bf16.mxu0 %v5264_v4  ;;  %v5270_v46 = vld [vmem:[%s5572_s29 + $0x190] sm:$0xff]   ;;  %v2467_v61 = vrot.slane %v5911_v11, %v2434_v22  ;;  %v2471_v62 = vrot.slane %v5911_v11, %v2438_v25  ;;  %v5275_v22 = vld [vmem:[%s5572_s29 + $0x160] sm:$0xff]  }
 0x844   : > { %v3024_v39 = vmax.f32 %v2786_v23, 0.0  ;;  %v3026_v40 = vmax.f32 %v2829_v24, 0.0  ;;  %v2479_v37 = vrot.slane %v5911_v11, %v2446_v26  ;;  %v5276_v25 = vld [vmem:[%s5572_s29 + $0x1e0] sm:$0xff]  }
 0x845   : > { %v5950_v41 = vpack.c.bf16 %v3023_v33, %v3007_v31  ;;  %v5952_v42 = vpack.c.bf16 %v3025_v34, %v3009_v32  ;;  %v5278_v23 = vld [vmem:[%s5572_s29 + $0x1a0] sm:$0xff]   ;;  %v5279_v31 = vld [vmem:[%s5572_s29 + $0x168] sm:$0xff]  }
 0x846   : > { %v3040_v17 = vpack.c.bf16 %v3024_v39, %v3008_v35  ;;  %v3042_v43 = vpack.c.bf16 %v3026_v40, %v3010_v38  ;;  %4959 = vmatpush3.bf16.msra.mxu1 %v5265_v29  ;;  %4981 = vmatpush3.bf16.msra.mxu0 %v5266_v30  ;;  %v2865_v44 = vpop.f32.mrb[28].mxu1  ;;  %v2908_v27 = vpop.f32.mrb[24].mxu0  ;;  %v5280_v32 = vld [vmem:[%s5572_s29 + $0x1e8] sm:$0xff]  }
 0x847   : > { %v2866_v47 = vadd.f32 %v2865_v44, %v2451_v5  ;;  %v2909_v48 = vadd.f32 %v2908_v27, %v2459_v15  ;;  %v2867_v49 = vpop.f32.mrb[29].mxu1  ;;  %v2910_v50 = vpop.f32.mrb[25].mxu0  ;;  %4960 = vmatprep.subr.bf16.mxu1 %v5267_v28  ;;  %4982 = vmatprep.subr.bf16.mxu0 %v5268_v16  ;;  %v5281_v44 = vld [vmem:[%s5572_s29 + $0x128] sm:$0xff]  }
 0x848   : > { %v2868_v53 = vadd.f32 %v2867_v49, %v2455_v13  ;;  %v2911_v54 = vadd.f32 %v2910_v50, %v2463_v14  ;;  %v2869_v55 = vpop.f32.mrb[30].mxu1  ;;  %v2912_v56 = vpop.f32.mrb[26].mxu0  ;;  %4196 = vmatprep.mubr.bf16.mxu1 %v3040_v17  ;;  %4237 = vmatprep.mubr.bf16.mxu0 %v3042_v43  ;;  %v5282_v27 = vld [vmem:[%s5572_s29 + $0x1a8] sm:$0xff]   ;;  %v5283_v49 = vld [vmem:[%s5572_s29 + $0x170] sm:$0xff]  }
 0x849   : > { %v2870_v57 = vadd.f32 %v2869_v55, %v2451_v5  ;;  %v2913_v58 = vadd.f32 %v2912_v56, %v2459_v15  ;;  %v2871_v59 = vpop.f32.mrb[31].mxu1  ;;  %v2914_v60 = vpop.f32.mrb[27].mxu0  ;;  %v3011_v4 = vmax.f32 %v2866_v47, 0.0  ;;  %v3013_v5 = vmax.f32 %v2909_v48, 0.0 }
 0x84a   : > { %v2872_v1 = vadd.f32 %v2871_v59, %v2455_v13  ;;  %v2915_v2 = vadd.f32 %v2914_v60, %v2463_v14  ;;  %4961 = vmatpush3.bf16.msra.mxu1 %v5269_v45  ;;  %4983 = vmatpush3.bf16.msra.mxu0 %v5270_v46  ;;  %v3012_v8 = vmax.f32 %v2868_v53, 0.0  ;;  %v3014_v10 = vmax.f32 %v2911_v54, 0.0  ;;  %v5277_v13 = vld [vmem:[%s5572_s29 + $0x120] sm:$0xff]   ;;  %v5286_v59 = vld [vmem:[%s5572_s29 + $0x1b0] sm:$0xff]   ;;  %v5287_v60 = vld [vmem:[%s5572_s29 + $0x178] sm:$0xff]  }
 0x84b   : > { %v3027_v6 = vmax.f32 %v2870_v57, 0.0  ;;  %v3029_v7 = vmax.f32 %v2913_v58, 0.0  ;;  %4962 = vmatprep.subr.bf16.mxu1 %v5271_v51  ;;  %4984 = vmatprep.subr.bf16.mxu0 %v5272_v52  ;;  %v5285_v58 = vld [vmem:[%s5572_s29 + $0x130] sm:$0xff]  }
 0x84c   : > { %v3028_v15 = vmax.f32 %v2872_v1, 0.0  ;;  %v3030_v18 = vmax.f32 %v2915_v2, 0.0  ;;  %v5290_v1 = vld [vmem:[%s5572_s29 + $0x1b8] sm:$0xff]   ;;  %v5291_v2 = vld [vmem:[%s5572_s29 + $0x240] sm:$0xff]  }
 0x84d   : > { %v5971_v19 = vpack.c.bf16 %v3027_v6, %v3011_v4  ;;  %v5973_v9 = vpack.c.bf16 %v3029_v7, %v3013_v5  ;;  %v5295_v4 = vld [vmem:[%s5572_s29 + $0x248] sm:$0xff]  }
 0x84e   : > { %v5975_v11 = vpack.c.bf16 %v3028_v15, %v3012_v8  ;;  %v5977_v26 = vpack.c.bf16 %v3030_v18, %v3014_v10  ;;  %4963 = vmatpush3.bf16.msra.mxu1 %v5273_v3  ;;  %4985 = vmatpush3.bf16.msra.mxu0 %v5274_v36  ;;  %v2951_v20 = vpop.f32.mrb[32].mxu1  ;;  %v2994_v21 = vpop.f32.mrb[28].mxu0  ;;  %v5292_v3 = vld [vmem:[%s5572_s29 + $0x2c0] sm:$0xff]   ;;  %v5296_v5 = vld [vmem:[%s5572_s29 + $0x2c8] sm:$0xff]   ;;  %v5303_v8 = vld [vmem:[%s5572_s29 + $0x258] sm:$0xff]  }
 0x84f   : > { %v2952_v24 = vadd.f32 %v2951_v20, %v2467_v61  ;;  %v2995_v29 = vadd.f32 %v2994_v21, %v5914_v12  ;;  %v2953_v30 = vpop.f32.mrb[33].mxu1  ;;  %v2996_v14 = vpop.f32.mrb[29].mxu0  ;;  %4964 = vmatprep.subr.bf16.mxu1 %v5275_v22  ;;  %4986 = vmatprep.subr.bf16.mxu0 %v5276_v25  ;;  %v5293_v36 = vld [vmem:[%s5572_s29 + $0x200] sm:$0xff]   ;;  %v5297_v6 = vld [vmem:[%s5572_s29 + $0x208] sm:$0xff]   ;;  %v5299_v22 = vld [vmem:[%s5572_s29 + $0x250] sm:$0xff]  }
 0x850   : > { %v2954_v33 = vadd.f32 %v2953_v30, %v2471_v62  ;;  %v2997_v34 = vadd.f32 %v2996_v14, %v2479_v37  ;;  %v2955_v28 = vpop.f32.mrb[34].mxu1  ;;  %v2998_v16 = vpop.f32.mrb[30].mxu0  ;;  %v5298_v7 = vld [vmem:[%s5572_s29 + $0x288] sm:$0xff]   ;;  %v5302_v25 = vld [vmem:[%s5572_s29 + $0x290] sm:$0xff]   ;;  %v5304_v10 = vld [vmem:[%s5572_s29 + $0x2d8] sm:$0xff]  }
 0x851   : > { %v2956_v35 = vadd.f32 %v2955_v28, %v2467_v61  ;;  %v2999_v38 = vadd.f32 %v2998_v16, %v5914_v12  ;;  %v2957_v39 = vpop.f32.mrb[35].mxu1  ;;  %v3000_v40 = vpop.f32.mrb[31].mxu0  ;;  %v3015_v45 = vmax.f32 %v2952_v24, 0.0  ;;  %v3017_v46 = vmax.f32 %v2995_v29, 0.0  ;;  %v5284_v12 = vld [vmem:[%s5572_s29 + $0x1f0] sm:$0xff]   ;;  %v5288_v61 = vld [vmem:[%s5572_s29 + $0x1f8] sm:$0xff]  }
 0x852   : > { %v2958_v17 = vadd.f32 %v2957_v39, %v2471_v62  ;;  %v3001_v43 = vadd.f32 %v3000_v40, %v2479_v37  ;;  %4965 = vmatpush3.bf16.msra.mxu1 %v5277_v13  ;;  %4987 = vmatpush3.bf16.msra.mxu0 %v5278_v23  ;;  %v3016_v50 = vmax.f32 %v2954_v33, 0.0  ;;  %v3018_v51 = vmax.f32 %v2997_v34, 0.0  ;;  %v5289_v62 = vld [vmem:[%s5572_s29 + $0x138] sm:$0xff]   ;;  %v5294_v37 = vld [vmem:[%s5572_s29 + $0x280] sm:$0xff]   ;;  %v5311_v13 = vld [vmem:[%s5572_s29 + $0x268] sm:$0xff]  }
 0x853   : > { %v3031_v47 = vmax.f32 %v2956_v35, 0.0  ;;  %v3033_v48 = vmax.f32 %v2999_v38, 0.0  ;;  %4966 = vmatprep.subr.bf16.mxu1 %v5279_v31  ;;  %4988 = vmatprep.subr.bf16.mxu0 %v5280_v32  ;;  %v5305_v15 = vld [vmem:[%s5572_s29 + $0x218] sm:$0xff]   ;;  %v5309_v20 = vld [vmem:[%s5572_s29 + $0x220] sm:$0xff]   ;;  %v5312_v23 = vld [vmem:[%s5572_s29 + $0x2e8] sm:$0xff]  }
 0x854   : > { %v3032_v52 = vmax.f32 %v2958_v17, 0.0  ;;  %v3034_v53 = vmax.f32 %v3001_v43, 0.0  ;;  %v5306_v18 = vld [vmem:[%s5572_s29 + $0x298] sm:$0xff]   ;;  %v5310_v21 = vld [vmem:[%s5572_s29 + $0x2a0] sm:$0xff]   ;;  %v5313_v24 = vld [vmem:[%s5572_s29 + $0x228] sm:$0xff]  }
 0x855   : > { %v5989_v54 = vpack.c.bf16 %v3031_v47, %v3015_v45  ;;  %v5991_v55 = vpack.c.bf16 %v3033_v48, %v3017_v46  ;;  %v5314_v29 = vld [vmem:[%s5572_s29 + $0x2a8] sm:$0xff]   ;;  %v5315_v30 = vld [vmem:[%s5572_s29 + $0x270] sm:$0xff]   ;;  %v5319_v33 = vld [vmem:[%s5572_s29 + $0x278] sm:$0xff]  }
 0x856   : > { %v5993_v56 = vpack.c.bf16 %v3032_v52, %v3016_v50  ;;  %v5995_v57 = vpack.c.bf16 %v3034_v53, %v3018_v51  ;;  %4967 = vmatpush3.bf16.msra.mxu1 %v5281_v44  ;;  %4989 = vmatpush3.bf16.msra.mxu0 %v5282_v27  ;;  %v5316_v14 = vld [vmem:[%s5572_s29 + $0x2f0] sm:$0xff]   ;;  %v5320_v34 = vld [vmem:[%s5572_s29 + $0x2f8] sm:$0xff]   ;;  %v5323_v35 = vld [vmem:[%s5572_s29 + $0x340] sm:$0xff]  }
 0x857   : > { %4968 = vmatprep.subr.bf16.mxu1 %v5283_v49  ;;  %4990 = vmatprep.subr.bf16.mxu0 %v5284_v12  ;;  %v5317_v31 = vld [vmem:[%s5572_s29 + $0x230] sm:$0xff]   ;;  %v5321_v28 = vld [vmem:[%s5572_s29 + $0x238] sm:$0xff]   ;;  %v5324_v38 = vld [vmem:[%s5572_s29 + $0x3c0] sm:$0xff]  }
 0x858   : > { %v5318_v32 = vld [vmem:[%s5572_s29 + $0x2b0] sm:$0xff]   ;;  %v5322_v16 = vld [vmem:[%s5572_s29 + $0x2b8] sm:$0xff]   ;;  %v5325_v39 = vld [vmem:[%s5572_s29 + $0x300] sm:$0xff]  }
 0x859   : > { %v5326_v40 = vld [vmem:[%s5572_s29 + $0x380] sm:$0xff]   ;;  %v5327_v17 = vld [vmem:[%s5572_s29 + $0x348] sm:$0xff]   ;;  %v5331_v45 = vld [vmem:[%s5572_s29 + $0x350] sm:$0xff]  }
 0x85a   : > { %4969 = vmatpush3.bf16.msra.mxu1 %v5285_v58  ;;  %4991 = vmatpush3.bf16.msra.mxu0 %v5286_v59  ;;  %v5328_v43 = vld [vmem:[%s5572_s29 + $0x3c8] sm:$0xff]   ;;  %v5334_v46 = vld [vmem:[%s5572_s29 + $0x390] sm:$0xff]   ;;  %v5335_v47 = vld [vmem:[%s5572_s29 + $0x358] sm:$0xff]  }
 0x85b   : > { %4970 = vmatprep.subr.bf16.mxu1 %v5287_v60  ;;  %4992 = vmatprep.subr.bf16.mxu0 %v5288_v61  ;;  %v5329_v44 = vld [vmem:[%s5572_s29 + $0x308] sm:$0xff]   ;;  %v5336_v48 = vld [vmem:[%s5572_s29 + $0x3d8] sm:$0xff]   ;;  %v5339_v50 = vld [vmem:[%s5572_s29 + $0x360] sm:$0xff]  }
 0x85c   : > { %v5330_v27 = vld [vmem:[%s5572_s29 + $0x388] sm:$0xff]   ;;  %v5337_v49 = vld [vmem:[%s5572_s29 + $0x318] sm:$0xff]   ;;  %v5340_v51 = vld [vmem:[%s5572_s29 + $0x3e0] sm:$0xff]  }
 0x85d   : > { %v5338_v12 = vld [vmem:[%s5572_s29 + $0x398] sm:$0xff]   ;;  %v5341_v52 = vld [vmem:[%s5572_s29 + $0x320] sm:$0xff]   ;;  %v5345_v58 = vld [vmem:[%s5572_s29 + $0x328] sm:$0xff]  }
 0x85e   : > { %4971 = vmatpush3.bf16.msra.mxu1 %v5289_v62  ;;  %4993 = vmatpush3.bf16.msra.mxu0 %v5290_v1  ;;  %v5342_v53 = vld [vmem:[%s5572_s29 + $0x3a0] sm:$0xff]   ;;  %v5346_v59 = vld [vmem:[%s5572_s29 + $0x3a8] sm:$0xff]   ;;  %v5347_v60 = vld [vmem:[%s5572_s29 + $0x370] sm:$0xff]  }
 0x85f   : > { %5000 = vmatprep.subr.bf16.mxu1 %v5291_v2  ;;  %5022 = vmatprep.subr.bf16.mxu0 %v5292_v3  ;;  %v5348_v61 = vld [vmem:[%s5572_s29 + $0x3f0] sm:$0xff]   ;;  %v5351_v2 = vld [vmem:[%s5572_s29 + $0x378] sm:$0xff]  }
 0x860   : > { %v5349_v62 = vld [vmem:[%s5572_s29 + $0x330] sm:$0xff]   ;;  %v5352_v3 = vld [vmem:[%s5572_s29 + $0x3f8] sm:$0xff]  }
 0x861   : > { %4197 = vmatmul.mubr.bf16.vlgmr.msra.gmra.mrb[40].mxu1 %v5950_v41  ;;  %4238 = vmatmul.mubr.bf16.vlgmr.msra.gmra.mrb[36].mxu0 %v5952_v42  ;;  %v5300_v41 = vld [vmem:[%s5572_s29 + $0x2d0] sm:$0xff]  }
 0x862   : > { %5001 = vmatpush3.bf16.msra.mxu1 %v5293_v36  ;;  %4278 = vmatprep.mubr.bf16.mxu1 %v5975_v11  ;;  %v5301_v42 = vld [vmem:[%s5572_s29 + $0x210] sm:$0xff]   ;;  %v5307_v11 = vld [vmem:[%s5572_s29 + $0x260] sm:$0xff]   ;;  %v5353_v36 = vld [vmem:[%s5572_s29 + $0x338] sm:$0xff]  }
 0x863   : > { %5023 = vmatpush3.bf16.msra.mxu0 %v5294_v37  ;;  %4319 = vmatprep.mubr.bf16.mxu0 %v5977_v26  ;;  %v5308_v26 = vld [vmem:[%s5572_s29 + $0x2e0] sm:$0xff]   ;;  %v5350_v1 = vld [vmem:[%s5572_s29 + $0x3b0] sm:$0xff]   ;;  %v5354_v37 = vld [vmem:[%s5572_s29 + $0x3b8] sm:$0xff]  }
 0x864   : > { %5002 = vmatprep.subr.bf16.mxu1 %v5295_v4  ;;  %5024 = vmatprep.subr.bf16.mxu0 %v5296_v5 }
 0x866   : > { %5003 = vmatpush3.bf16.msra.mxu1 %v5297_v6  ;;  %v4728_v6 = vld [vmem:[%s731_s20] ss:$0 sm:$0xff] }
 0x867   : > { %5025 = vmatpush3.bf16.msra.mxu0 %v5298_v7  ;;  %5004 = vmatprep.subr.bf16.mxu1 %v5299_v22 }
 0x868   : > { %5026 = vmatprep.subr.bf16.mxu0 %v5300_v41 }
 0x86a   : > { %5005 = vmatpush3.bf16.msra.mxu1 %v5301_v42 }
 0x86b   : > { %5027 = vmatpush3.bf16.msra.mxu0 %v5302_v25  ;;  %5006 = vmatprep.subr.bf16.mxu1 %v5303_v8 }
 0x86c   : > { %5028 = vmatprep.subr.bf16.mxu0 %v5304_v10 }
 0x86e   : > { %5007 = vmatpush3.bf16.msra.mxu1 %v5305_v15 }
 0x86f   : > { %5029 = vmatpush3.bf16.msra.mxu0 %v5306_v18  ;;  %5008 = vmatprep.subr.bf16.mxu1 %v5307_v11 }
 0x870   : > { %5030 = vmatprep.subr.bf16.mxu0 %v5308_v26 }
 0x872   : > { %5009 = vmatpush3.bf16.msra.mxu1 %v5309_v20 }
 0x873   : > { %5031 = vmatpush3.bf16.msra.mxu0 %v5310_v21  ;;  %5010 = vmatprep.subr.bf16.mxu1 %v5311_v13 }
 0x874   : > { %5032 = vmatprep.subr.bf16.mxu0 %v5312_v23 }
 0x876   : > { %5011 = vmatpush3.bf16.msra.mxu1 %v5313_v24 }
 0x877   : > { %5033 = vmatpush3.bf16.msra.mxu0 %v5314_v29  ;;  %5012 = vmatprep.subr.bf16.mxu1 %v5315_v30 }
 0x878   : > { %5034 = vmatprep.subr.bf16.mxu0 %v5316_v14 }
 0x87a   : > { %5013 = vmatpush3.bf16.msra.mxu1 %v5317_v31 }
 0x87b   : > { %5035 = vmatpush3.bf16.msra.mxu0 %v5318_v32  ;;  %5014 = vmatprep.subr.bf16.mxu1 %v5319_v33 }
 0x87c   : > { %5036 = vmatprep.subr.bf16.mxu0 %v5320_v34 }
 0x87e   : > { %5015 = vmatpush3.bf16.msra.mxu1 %v5321_v28 }
 0x87f   : > { %5037 = vmatpush3.bf16.msra.mxu0 %v5322_v16  ;;  %5044 = vmatprep.subr.bf16.mxu1 %v5323_v35 }
 0x880   : > { %5066 = vmatprep.subr.bf16.mxu0 %v5324_v38 }
 0x881   : > { %4279 = vmatmul.mubr.bf16.vlgmr.msra.gmra.mrb[44].mxu1 %v5971_v19  ;;  %v5332_v19 = vld [vmem:[%s5572_s29 + $0x3d0] sm:$0xff]  }
 0x882   : > { %4320 = vmatmul.mubr.bf16.vlgmr.msra.gmra.mrb[40].mxu0 %v5973_v9  ;;  %5045 = vmatpush3.bf16.msra.mxu1 %v5325_v39  ;;  %v5333_v9 = vld [vmem:[%s5572_s29 + $0x310] sm:$0xff]  }
 0x883   : > { %4360 = vmatprep.mubr.bf16.mxu1 %v5993_v56  ;;  %5067 = vmatpush3.bf16.msra.mxu0 %v5326_v40  ;;  %v5343_v56 = vld [vmem:[%s5572_s29 + $0x368] sm:$0xff]  }
 0x884   : > { %4401 = vmatprep.mubr.bf16.mxu0 %v5995_v57  ;;  %5046 = vmatprep.subr.bf16.mxu1 %v5327_v17  ;;  %v5344_v57 = vld [vmem:[%s5572_s29 + $0x3e8] sm:$0xff]  }
 0x885   : > { %5068 = vmatprep.subr.bf16.mxu0 %v5328_v43 }
 0x886   : > { %5047 = vmatpush3.bf16.msra.mxu1 %v5329_v44 }
 0x887   : > { %5069 = vmatpush3.bf16.msra.mxu0 %v5330_v27  ;;  %5048 = vmatprep.subr.bf16.mxu1 %v5331_v45 }
 0x888   : > { %5070 = vmatprep.subr.bf16.mxu0 %v5332_v19 }
 0x88a   : > { %5049 = vmatpush3.bf16.msra.mxu1 %v5333_v9 }
 0x88b   : > { %5071 = vmatpush3.bf16.msra.mxu0 %v5334_v46  ;;  %5050 = vmatprep.subr.bf16.mxu1 %v5335_v47 }
 0x88c   : > { %5072 = vmatprep.subr.bf16.mxu0 %v5336_v48 }
 0x88e   : > { %5051 = vmatpush3.bf16.msra.mxu1 %v5337_v49 }
 0x88f   : > { %5073 = vmatpush3.bf16.msra.mxu0 %v5338_v12  ;;  %5052 = vmatprep.subr.bf16.mxu1 %v5339_v50 }
 0x890   : > { %5074 = vmatprep.subr.bf16.mxu0 %v5340_v51 }
 0x892   : > { %5053 = vmatpush3.bf16.msra.mxu1 %v5341_v52 }
 0x893   : > { %5075 = vmatpush3.bf16.msra.mxu0 %v5342_v53  ;;  %5054 = vmatprep.subr.bf16.mxu1 %v5343_v56 }
 0x894   : > { %5076 = vmatprep.subr.bf16.mxu0 %v5344_v57 }
 0x896   : > { %5055 = vmatpush3.bf16.msra.mxu1 %v5345_v58 }
 0x897   : > { %5077 = vmatpush3.bf16.msra.mxu0 %v5346_v59  ;;  %5056 = vmatprep.subr.bf16.mxu1 %v5347_v60 }
 0x898   : > { %5078 = vmatprep.subr.bf16.mxu0 %v5348_v61 }
 0x89a   : > { %5057 = vmatpush3.bf16.msra.mxu1 %v5349_v62 }
 0x89b   : > { %5079 = vmatpush3.bf16.msra.mxu0 %v5350_v1  ;;  %5058 = vmatprep.subr.bf16.mxu1 %v5351_v2 }
 0x89c   : > { %5080 = vmatprep.subr.bf16.mxu0 %v5352_v3 }
 0x89e   : > { %5059 = vmatpush3.bf16.msra.mxu1 %v5353_v36 }
 0x89f   : > { %5081 = vmatpush3.bf16.msra.mxu0 %v5354_v37 }
 0x8a1   : > { %4361 = vmatmul.mubr.bf16.vlgmr.msra.gmra.mrb[48].mxu1 %v5989_v54 }
 0x8a2   : > { %4402 = vmatmul.mubr.bf16.vlgmr.msra.gmra.mrb[44].mxu0 %v5991_v55 }
 0x914   : > { %v4928_v4 = vpop.f32.mrb[36].mxu1  ;;  %v4950_v5 = vpop.f32.mrb[32].mxu0 }
 0x915   : > { %v4929_v7 = vpop.f32.mrb[37].mxu1  ;;  %v4951_v22 = vpop.f32.mrb[33].mxu0 }
 0x916   : > { %v4930_v41 = vadd.f32 %v4929_v7, %v4928_v4  ;;  %v4952_v42 = vadd.f32 %v4951_v22, %v4950_v5  ;;  %v4931_v25 = vpop.f32.mrb[38].mxu1  ;;  %v4953_v8 = vpop.f32.mrb[34].mxu0 }
 0x917   : > { %v4932_v10 = vpop.f32.mrb[39].mxu1  ;;  %v4954_v15 = vpop.f32.mrb[35].mxu0 }
 0x918   : > { %v4117_v18 = vadd.f32 %v4930_v41, %v4728_v6  ;;  %v4933_v11 = vadd.f32 %v4932_v10, %v4931_v25  ;;  %v4955_v54 = vadd.f32 %v4954_v15, %v4953_v8 }
 0x91a   : > { %v4158_v26 = vadd.f32 %v4952_v42, %v4117_v18  ;;  %v4120_v55 = vadd.f32 %v4933_v11, %v4728_v6 }
 0x91c   : > { %v4161_v20 = vadd.f32 %v4955_v54, %v4120_v55 }
 0x934   : > { %v4972_v21 = vpop.f32.mrb[40].mxu1  ;;  %v4994_v13 = vpop.f32.mrb[36].mxu0 }
 0x935   : > { %v4973_v23 = vpop.f32.mrb[41].mxu1  ;;  %v4995_v24 = vpop.f32.mrb[37].mxu0 }
 0x936   : > { %v4974_v29 = vadd.f32 %v4973_v23, %v4972_v21  ;;  %v4996_v30 = vadd.f32 %v4995_v24, %v4994_v13  ;;  %v4975_v14 = vpop.f32.mrb[42].mxu1  ;;  %v4997_v31 = vpop.f32.mrb[38].mxu0 }
 0x937   : > { %v4976_v32 = vpop.f32.mrb[43].mxu1  ;;  %v4998_v33 = vpop.f32.mrb[39].mxu0 }
 0x938   : > { %v4199_v34 = vadd.f32 %v4974_v29, %v4158_v26  ;;  %v4977_v28 = vadd.f32 %v4976_v32, %v4975_v14  ;;  %v4999_v16 = vadd.f32 %v4998_v33, %v4997_v31  ;;  %v4857_v32 = vld [vmem:[%s734_s21] ss:$0 sm:$0xff] }
 0x93a   : > { %v4240_v35 = vadd.f32 %v4996_v30, %v4199_v34  ;;  %v4202_v38 = vadd.f32 %v4977_v28, %v4161_v20 }
 0x93c   : > { %v4243_v39 = vadd.f32 %v4999_v16, %v4202_v38  ;;  %v4858_v16 = vld [vmem:[%s737_s23] ss:$0 sm:$0xff]  ;;  %s6156_s23 = sld [smem:[#allocation12_spill]] (!%p4859_p5) }
 0x954   : > { %v5016_v40 = vpop.f32.mrb[44].mxu1 }
 0x955   : > { %v5038_v17 = vpop.f32.mrb[40].mxu0  ;;  %v5017_v43 = vpop.f32.mrb[45].mxu1 }
 0x956   : > { %v5018_v44 = vadd.f32 %v5017_v43, %v5016_v40  ;;  %v5039_v27 = vpop.f32.mrb[41].mxu0  ;;  %v5019_v45 = vpop.f32.mrb[46].mxu1  ;;  %v4860_v43 = vld [vmem:[%s6155_s25] ss:$0 sm:$0xff] (!%p4859_p5) }
 0x957   : > { %v5040_v19 = vadd.f32 %v5039_v27, %v5038_v17  ;;  %v5041_v9 = vpop.f32.mrb[42].mxu0  ;;  %v5020_v46 = vpop.f32.mrb[47].mxu1 }
 0x958   : > { %v4281_v47 = vadd.f32 %v5018_v44, %v4240_v35  ;;  %v5021_v48 = vadd.f32 %v5020_v46, %v5019_v45  ;;  %v5042_v49 = vpop.f32.mrb[43].mxu0  ;;  %v4861_v46 = vld [vmem:[#allocation3] ss:$0 sm:$0xff] (!%p4859_p5) }
 0x959   : > { %v5043_v12 = vadd.f32 %v5042_v49, %v5041_v9 }
 0x95a   : > { %v4322_v50 = vadd.f32 %v5040_v19, %v4281_v47  ;;  %v4284_v51 = vadd.f32 %v5021_v48, %v4243_v39 }
 0x95c   : > { %v4325_v52 = vadd.f32 %v5043_v12, %v4284_v51 }
 0x974   : > { %v5060_v53 = vpop.f32.mrb[48].mxu1 }
 0x975   : > { %v5082_v56 = vpop.f32.mrb[44].mxu0  ;;  %v5061_v57 = vpop.f32.mrb[49].mxu1 }
 0x976   : > { %v5062_v58 = vadd.f32 %v5061_v57, %v5060_v53  ;;  %v5083_v59 = vpop.f32.mrb[45].mxu0  ;;  %v5063_v60 = vpop.f32.mrb[50].mxu1 }
 0x977   : > { %v5084_v61 = vadd.f32 %v5083_v59, %v5082_v56  ;;  %v5085_v62 = vpop.f32.mrb[46].mxu0  ;;  %v5064_v1 = vpop.f32.mrb[51].mxu1 }
 0x978   : > { %v4363_v2 = vadd.f32 %v5062_v58, %v4322_v50  ;;  %v5065_v3 = vadd.f32 %v5064_v1, %v5063_v60  ;;  %v5086_v36 = vpop.f32.mrb[47].mxu0 }
 0x979   : > { %v5087_v37 = vadd.f32 %v5086_v36, %v5085_v62 }
 0x97a   : > { %v4404_v4 = vadd.f32 %v5084_v61, %v4363_v2  ;;  %v4366_v5 = vadd.f32 %v5065_v3, %v4325_v52 }
 0x97c   : > { %v4410_v6 = vadd.f32 %v4404_v4, %v5827_v63  ;;  %v4407_v7 = vadd.f32 %v5087_v37, %v4366_v5 }
 0x97e   : > { %v4411_v22 = vadd.f32 %v4407_v7, %v5829_v0  ;;  %v4414_v41 = vsel %vm795_vm1, %v4410_v6, 0.0  ;;  %v4422_v42 = vmul.f32 %v4410_v6, %v4410_v6 }
 0x97f   : > { %4415 = vadd.xlane.f32.xlu1 %v4414_v41 }
 0x980   : > { %v4417_v25 = vsel %vm795_vm1, %v4411_v22, 0.0  ;;  %v4423_v8 = vmul.f32 %v4411_v22, %v4411_v22  ;;  %v4424_v10 = vsel %vm795_vm1, %v4422_v42, 0.0 }
 0x981   : > { %4418 = vadd.xlane.f32.xlu0 %v4417_v25 }
 0x982   : > { %v4427_v15 = vsel %vm795_vm1, %v4423_v8, 0.0 }
 0x983   : > { %4425 = vadd.xlane.f32.xlu1 %v4424_v10 }
 0x985   : > { %4428 = vadd.xlane.f32.xlu0 %v4427_v15 }
 0xa0c   : > { %v4416_v18 = vpop.xlane.xlu1 %4415 }
 0xa0d   : > { %v4420_v11 = vmul.f32 0.03125, %v4416_v18 }
 0xa0e   : > { %v4419_v63 = vpop.xlane.xlu0 %4418 }
 0xa0f   : > { %v4421_v54 = vmul.f32 0.03125, %v4419_v63  ;;  %v4432_v26 = vmul.f32 %v4420_v11, %v4420_v11  ;;  %v4436_v14 = vsub.f32 %v4410_v6, %v4420_v11 }
 0xa10   : > { %v4426_v0 = vpop.xlane.xlu1 %4425 }
 0xa11   : > { %v4430_v55 = vmul.f32 0.03125, %v4426_v0  ;;  %v4433_v21 = vmul.f32 %v4421_v54, %v4421_v54  ;;  %v4437_v33 = vsub.f32 %v4411_v22, %v4421_v54 }
 0xa12   : > { %v4429_v20 = vpop.xlane.xlu0 %4428 }
 0xa13   : > { %v4434_v13 = vsub.f32 %v4430_v55, %v4432_v26  ;;  %v4431_v23 = vmul.f32 0.03125, %v4429_v20 }
 0xa15   : > { %v4438_v24 = vadd.f32 1e-05, %v4434_v13  ;;  %v4435_v29 = vsub.f32 %v4431_v23, %v4433_v21 }
 0xa17   : > { %5391 = vrsqrt.f32 %v4438_v24  ;;  %v4439_v30 = vadd.f32 1e-05, %v4435_v29 }
 0xa19   : > { %5393 = vrsqrt.f32 %v4439_v30 }
 0xa21   : > { %v5392_v31 = vpop.eup %5391 }
 0xa22   : > { %v4442_v34 = vmul.f32 %v5392_v31, %v4436_v14 }
 0xa23   : > { %v5394_v28 = vpop.eup %5393 }
 0xa24   : > { %v4450_v35 = vmul.f32 %v4857_v32, %v4442_v34  ;;  %v4443_v38 = vmul.f32 %v5394_v28, %v4437_v33  ;;  %4465 = sbr.rel (%p4859_p5) target bundleno = 2752 (0xac0), region = 100 }
 0xa26   : > { %v4458_v39 = vadd.f32 %v4858_v16, %v4450_v35  ;;  %v4451_v40 = vmul.f32 %v4857_v32, %v4443_v38 }
 0xa28   : > { %4460 = vst.msk [vmem:[#allocation2] sm:$0xff] %vm795_vm1, %v4458_v39  ;;  %v4459_v17 = vadd.f32 %v4858_v16, %v4451_v40  ;;  %v4473_v44 = vmul.f32 (!%p4859_p5), %v4860_v43, %v4458_v39 }
 0xa2a   : > { %4461 = vst.msk [vmem:[#allocation2 + $0x8] sm:$0xff] %vm795_vm1, %v4459_v17  ;;  %v4474_v27 = vmul.f32 (!%p4859_p5), %v4860_v43, %v4459_v17  ;;  %v4481_v45 = vsel (!%p4859_p5), %vm4480_vm6, %v4473_v44, 0.0 }
 0xa2b   : > { %4482 = vadd.xlane.f32.xlu0 %v4481_v45 }
 0xa2c   : > { %v4477_v19 = vrot.slane %v4474_v27, 7 }
 0xa2e   : > { %v4485_v9 = vsel %vm4484_vm7, %v4477_v19, 0.0 }
 0xa2f   : > { %4486 = vadd.xlane.f32.xlu0 %v4485_v9 }
 0xab8   : > { %v4483_v47 = vpop.xlane.xlu0 %4482 }
 0xab9   : > { %v4495_v48 = vadd.f32 %v4861_v46, %v4483_v47 }
 0xabb   : > { %4498 = vst.msk [vmem:[%s6156_s23 - $0x7] sm:$0x80] %vm4497_vm8, %v4495_v48 }
 0xabc   : > { %v4487_v49 = vpop.xlane.xlu0 %4486 }
 0xabd   : > { %v4496_v12 = vadd.f32 %v4861_v46, %v4487_v49 }
 0xabf   : > { %4500 = vst.msk [vmem:[%s6156_s23 + $0x1] sm:$0x1] %vm4499_vm9, %v4496_v12 }
 0xac0 PF: > { %s6157_s6 = sld [smem:[#allocation4_spill]] }
 0xac6   : > { %s30_s29 = sadd.s32 1, %s6157_s6  }
 0xac7   : > { %p27_p6 = scmp.ge.s32.totalorder %s30_s29, 4  }
 0xac9   :  { %29 = sbr.rel (!%p27_p6) target bundleno = 9 (0x9), region = 159 }

</bundles_post_ra>
